<compile_context>
chip_gen: v7x
topology: tpu7x:2x2x1
jax: 0.10.0
libtpu: 0.0.40
codegen_flags: <defaults>
</compile_context>

<pallas_src>
import functools
import math

import jax
import jax.numpy as jnp
import numpy as np
from jax.experimental import pallas as pl
from jax.experimental.pallas import tpu as pltpu

LN_EPS = 1e-5


def _layer_norm(x, gamma, beta):
    mu = jnp.mean(x, axis=-1, keepdims=True)
    var = jnp.mean((x - mu) ** 2, axis=-1, keepdims=True)
    return (x - mu) * jax.lax.rsqrt(var + LN_EPS) * gamma + beta


def sublayer_kernel(
    # inputs
    x_ref,
    wq_ref, bq_ref, wk_ref, bk_ref, wv_ref, bv_ref,
    wo_ref, bo_ref, g1_ref, be1_ref,
    w1_ref, b1_ref, w2_ref, b2_ref, g2_ref, be2_ref,
    # outputs + scratch (attn_ref only present when return_attn)
    *refs,
    num_heads, head_size, q_tile, compute_dtype, return_attn,
):
    if return_attn:
        out_ref, attn_ref, kt_buf, v_buf = refs
    else:
        out_ref, kt_buf, v_buf = refs
        attn_ref = None

    t = pl.program_id(1)                    # query-tile index
    dh = head_size
    scale = 1.0 / math.sqrt(head_size)

    # ---- K/V projection (all heads fused) once per batch element; resident in VMEM.
    @pl.when(t == 0)
    def _():
        x_kv = x_ref[0].astype(compute_dtype)                                   # (S, D)
        k = jnp.dot(x_kv, wk_ref[...], preferred_element_type=jnp.float32) + bk_ref[...]
        v = jnp.dot(x_kv, wv_ref[...], preferred_element_type=jnp.float32) + bv_ref[...]
        kt_buf[...] = k.T.astype(compute_dtype)                                 # (proj, S)
        v_buf[...] = v.astype(compute_dtype)                                    # (S, proj)

    # ---- q-tile slice of the resident full-sequence block.
    start = pl.multiple_of(t * q_tile, q_tile)
    x_q = x_ref[0, pl.ds(start, q_tile), :]                                     # (TQ, D) f32

    # ---- Q projection (all heads fused); fold the softmax scale into q.
    q = jnp.dot(x_q.astype(compute_dtype), wq_ref[...],
                preferred_element_type=jnp.float32) + bq_ref[...]               # (TQ, proj)
    q = (q * scale).astype(compute_dtype)

    # ---- per-head scores / softmax / context (unrolled; heads packed along lanes).
    ctx_parts = []
    for h in range(num_heads):
        qh = q[:, h * dh:(h + 1) * dh]                                          # (TQ, Dh)
        kh = kt_buf[h * dh:(h + 1) * dh, :]                                     # (Dh, S)
        s = jnp.dot(qh, kh, preferred_element_type=jnp.float32)                 # (TQ, S)
        s = s - jnp.max(s, axis=-1, keepdims=True)
        e = jnp.exp(s)
        p = e * pl.reciprocal(jnp.sum(e, axis=-1, keepdims=True), approx=True)
        if return_attn:
            attn_ref[0, h] = p.astype(attn_ref.dtype)
        vh = v_buf[:, h * dh:(h + 1) * dh]                                      # (S, Dh)
        ctx_parts.append(jnp.dot(p.astype(compute_dtype), vh,
                                 preferred_element_type=jnp.float32))           # (TQ, Dh)
    ctx = jnp.concatenate(ctx_parts, axis=-1)                                   # (TQ, proj)

    # ---- single fused output projection + residual LayerNorm + residual feed-forward.
    attn_out = jnp.dot(ctx.astype(compute_dtype), wo_ref[...],
                       preferred_element_type=jnp.float32) + bo_ref[...]        # (TQ, D)
    h1 = _layer_norm(attn_out + x_q.astype(jnp.float32), g1_ref[...], be1_ref[...])
    ff = jnp.dot(h1.astype(compute_dtype), w1_ref[...],
                 preferred_element_type=jnp.float32) + b1_ref[...]
    ff = jnp.maximum(ff, 0.0)                                                   # ReLU (dropout = id)
    ff = jnp.dot(ff.astype(compute_dtype), w2_ref[...],
                 preferred_element_type=jnp.float32) + b2_ref[...]
    out_ref[0] = _layer_norm(h1 + ff, g2_ref[...], be2_ref[...]).astype(out_ref.dtype)


def _vmem_capacity_bytes():
    try:
        return int(pltpu.get_tpu_info().vmem_capacity_bytes)
    except Exception:
        return 64 * 2**20  # conservative (v7x per-TC) fallback


def _choose_q_tile(seq_len, requested, align):
    if requested >= seq_len:
        return seq_len
    t = max(align, (requested // align) * align)
    while t >= align:
        if seq_len % t == 0:
            return t
        t -= align
    return seq_len


def sublayer_forward(x, params, *, num_heads, head_size, compute_dtype=jnp.bfloat16,
                     q_tile=None, return_attn=True, attn_dtype=jnp.float32):
    B, S, D = x.shape
    proj = num_heads * head_size
    inner = params["w1"].shape[1]
    assert params["wq"].shape == (D, proj)

    cd = jnp.dtype(compute_dtype)
    vmem_cap = _vmem_capacity_bytes()

    if q_tile is None:
        # 128 MiB VMEM parts (v5e/v6e) take a bigger tile; v7x (64 MiB) stays at 256.
        q_tile = 512 if vmem_cap >= 100 * 2**20 else 256
    align = 16 if cd == jnp.dtype(jnp.bfloat16) else 8
    tq = _choose_q_tile(S, q_tile, align)
    n_tq = S // tq

    plist = [
        params["wq"].astype(cd), params["bq"].astype(jnp.float32),
        params["wk"].astype(cd), params["bk"].astype(jnp.float32),
        params["wv"].astype(cd), params["bv"].astype(jnp.float32),
        params["wo"].astype(cd), params["bo"].astype(jnp.float32),
        params["g1"].astype(jnp.float32), params["be1"].astype(jnp.float32),
        params["w1"].astype(cd), params["b1"].astype(jnp.float32),
        params["w2"].astype(cd), params["b2"].astype(jnp.float32),
        params["g2"].astype(jnp.float32), params["be2"].astype(jnp.float32),
    ]

    def full_spec(p):
        nd = p.ndim
        return pl.BlockSpec(p.shape, lambda b, t, _nd=nd: (0,) * _nd)

    in_specs = ([pl.BlockSpec((1, S, D), lambda b, t: (b, 0, 0))]   # full-seq x, resident per b
                + [full_spec(p) for p in plist])

    out_shapes = [jax.ShapeDtypeStruct((B, S, D), x.dtype)]
    out_specs = [pl.BlockSpec((1, tq, D), lambda b, t: (b, t, 0))]
    if return_attn:
        out_shapes.append(jax.ShapeDtypeStruct((B, num_heads, S, S), attn_dtype))
        out_specs.append(pl.BlockSpec((1, num_heads, tq, S), lambda b, t: (b, 0, t, 0)))

    scratch_shapes = [
        pltpu.VMEM((proj, S), cd),   # K^T (heads packed along sublanes, lane dim = S)
        pltpu.VMEM((S, proj), cd),   # V   (heads packed along lanes)
    ]

    # VMEM budget from the chosen tiles, clamped to 90% of this generation's capacity.
    def nbytes(shape, dt):
        return int(np.prod(shape)) * jnp.dtype(dt).itemsize

    est = 2 * nbytes((1, S, D), x.dtype)                       # resident x (double-buffered)
    est += 2 * nbytes((1, tq, D), x.dtype)                     # output tile stream
    if return_attn:
        est += 2 * nbytes((1, num_heads, tq, S), attn_dtype)
    est += 2 * sum(int(p.size) * p.dtype.itemsize for p in plist)
    est += nbytes((proj, S), cd) + nbytes((S, proj), cd)       # K/V scratch
    est += 6 * nbytes((tq, S), jnp.float32)                    # softmax temps
    est += 6 * nbytes((tq, max(D, proj, inner)), jnp.float32)  # projection / FF temps
    vmem_limit = int(min(max(2 * est, 16 * 2**20), int(0.9 * vmem_cap)))

    kernel = functools.partial(
        sublayer_kernel, num_heads=num_heads, head_size=head_size, q_tile=tq,
        compute_dtype=cd, return_attn=return_attn)

    res = pl.pallas_call(
        kernel,
        grid=(B, n_tq),
        in_specs=in_specs,
        out_specs=out_specs,
        out_shape=tuple(out_shapes),
        scratch_shapes=scratch_shapes,
        compiler_params=pltpu.CompilerParams(
            dimension_semantics=("parallel", "arbitrary"),
            vmem_limit_bytes=vmem_limit,
        ),
    )(x, *plist)

    return (res[0], res[1]) if return_attn else res[0]


def sublayer_reference(x, p, *, num_heads, head_size):
    """Pure-JAX reference for correctness checking."""
    def ln(v, g, b):
        mu = jnp.mean(v, -1, keepdims=True)
        var = jnp.mean((v - mu) ** 2, -1, keepdims=True)
        return (v - mu) / jnp.sqrt(var + LN_EPS) * g + b

    B, S, D = x.shape
    q = x @ p["wq"] + p["bq"]
    k = x @ p["wk"] + p["bk"]
    v = x @ p["wv"] + p["bv"]
    q = q.reshape(B, S, num_heads, head_size).transpose(0, 2, 1, 3)
    k = k.reshape(B, S, num_heads, head_size).transpose(0, 2, 1, 3)
    v = v.reshape(B, S, num_heads, head_size).transpose(0, 2, 1, 3)
    scores = jnp.einsum("bhqd,bhkd->bhqk", q, k) / math.sqrt(head_size)
    attn = jax.nn.softmax(scores, axis=-1)
    ctx = jnp.einsum("bhqk,bhkd->bhqd", attn, v).transpose(0, 2, 1, 3).reshape(B, S, -1)
    attn_out = ctx @ p["wo"] + p["bo"]
    h1 = ln(attn_out + x, p["g1"], p["be1"])
    ff = jax.nn.relu(h1 @ p["w1"] + p["b1"]) @ p["w2"] + p["b2"]
    return ln(h1 + ff, p["g2"], p["be2"]), attn


if __name__ == "__main__":
    # small shapes consistent with the module
    B, S = 2, 8
    input_size, num_heads, head_size, inner_size = 32, 4, 8, 64
    proj = num_heads * head_size

    key = jax.random.PRNGKey(0)
    ks = jax.random.split(key, 8)
    sc = 0.05
    params = {
        "wq": sc * jax.random.normal(ks[0], (input_size, proj), jnp.float32),
        "bq": jnp.zeros((1, proj), jnp.float32),
        "wk": sc * jax.random.normal(ks[1], (input_size, proj), jnp.float32),
        "bk": jnp.zeros((1, proj), jnp.float32),
        "wv": sc * jax.random.normal(ks[2], (input_size, proj), jnp.float32),
        "bv": jnp.zeros((1, proj), jnp.float32),
        "wo": sc * jax.random.normal(ks[3], (proj, input_size), jnp.float32),
        "bo": jnp.zeros((1, input_size), jnp.float32),
        "g1": jnp.ones((1, input_size), jnp.float32),
        "be1": jnp.zeros((1, input_size), jnp.float32),
        "w1": sc * jax.random.normal(ks[4], (input_size, inner_size), jnp.float32),
        "b1": 0.01 * jnp.ones((1, inner_size), jnp.float32),
        "w2": sc * jax.random.normal(ks[5], (inner_size, input_size), jnp.float32),
        "b2": 0.01 * jnp.ones((1, input_size), jnp.float32),
        "g2": jnp.ones((1, input_size), jnp.float32),
        "be2": jnp.zeros((1, input_size), jnp.float32),
    }
    x = jax.random.normal(ks[6], (B, S, input_size), jnp.float32)

    ref_out, ref_attn = sublayer_reference(x, params, num_heads=num_heads, head_size=head_size)

    # f32 MXU path (only the approximate softmax reciprocal differs from the reference).
    out32, attn32 = sublayer_forward(x, params, num_heads=num_heads, head_size=head_size,
                                     compute_dtype=jnp.float32)
    jax.block_until_ready((out32, attn32))
    np.testing.assert_allclose(np.asarray(out32), np.asarray(ref_out), atol=2e-2, rtol=2e-2)
    np.testing.assert_allclose(np.asarray(attn32), np.asarray(ref_attn), atol=1e-2, rtol=1e-2)

    # bf16 MXU path (f32 accumulation + f32 softmax/LayerNorm), bf16 attention weights.
    outbf, attnbf = sublayer_forward(x, params, num_heads=num_heads, head_size=head_size,
                                     compute_dtype=jnp.bfloat16, attn_dtype=jnp.bfloat16)
    jax.block_until_ready((outbf, attnbf))
    np.testing.assert_allclose(np.asarray(outbf.astype(jnp.float32)), np.asarray(ref_out),
                               atol=8e-2, rtol=8e-2)
    np.testing.assert_allclose(np.asarray(attnbf.astype(jnp.float32)), np.asarray(ref_attn),
                               atol=2e-2, rtol=2e-2)

    # Attention-weights output dropped entirely (removes the dominant O(B*H*S^2) HBM stream).
    out_only = sublayer_forward(x, params, num_heads=num_heads, head_size=head_size,
                                compute_dtype=jnp.float32, return_attn=False)
    jax.block_until_ready(out_only)
    np.testing.assert_allclose(np.asarray(out_only), np.asarray(out32), atol=1e-5, rtol=1e-5)

    print("KERNEL_OK")
</pallas_src>

<mosaic_0001>
module attributes {stable_mosaic.version = 11 : i64} {
  func.func @sublayer_kernel(%arg0: i32, %arg1: i32, %arg2: memref<1x8x32xf32, #tpu.memory_space<vmem>>, %arg3: memref<32x32xf32, #tpu.memory_space<vmem>>, %arg4: memref<1x32xf32, #tpu.memory_space<vmem>>, %arg5: memref<32x32xf32, #tpu.memory_space<vmem>>, %arg6: memref<1x32xf32, #tpu.memory_space<vmem>>, %arg7: memref<32x32xf32, #tpu.memory_space<vmem>>, %arg8: memref<1x32xf32, #tpu.memory_space<vmem>>, %arg9: memref<32x32xf32, #tpu.memory_space<vmem>>, %arg10: memref<1x32xf32, #tpu.memory_space<vmem>>, %arg11: memref<1x32xf32, #tpu.memory_space<vmem>>, %arg12: memref<1x32xf32, #tpu.memory_space<vmem>>, %arg13: memref<32x64xf32, #tpu.memory_space<vmem>>, %arg14: memref<1x64xf32, #tpu.memory_space<vmem>>, %arg15: memref<64x32xf32, #tpu.memory_space<vmem>>, %arg16: memref<1x32xf32, #tpu.memory_space<vmem>>, %arg17: memref<1x32xf32, #tpu.memory_space<vmem>>, %arg18: memref<1x32xf32, #tpu.memory_space<vmem>>, %arg19: memref<1x8x32xf32, #tpu.memory_space<vmem>>, %arg20: memref<1x4x8x8xf32, #tpu.memory_space<vmem>>, %arg21: memref<32x8xf32, #tpu.memory_space<vmem>>, %arg22: memref<8x32xf32, #tpu.memory_space<vmem>>) attributes {dimension_semantics = [#tpu.dimension_semantics<parallel>, #tpu.dimension_semantics<arbitrary>], iteration_bounds = array<i64: 2, 1>, scalar_prefetch = 0 : i64, scratch_operands = 2 : i64, tpu.core_type = #tpu.core_type<tc>, window_params = [{transform_indices = @transform_0, window_bounds = array<i64: 1, 8, 32>}, {pipeline_mode = #tpu.pipeline_mode<synchronous>, transform_indices = @transform_1, window_bounds = array<i64: 32, 32>}, {pipeline_mode = #tpu.pipeline_mode<synchronous>, transform_indices = @transform_2, window_bounds = array<i64: 1, 32>}, {pipeline_mode = #tpu.pipeline_mode<synchronous>, transform_indices = @transform_3, window_bounds = array<i64: 32, 32>}, {pipeline_mode = #tpu.pipeline_mode<synchronous>, transform_indices = @transform_4, window_bounds = array<i64: 1, 32>}, {pipeline_mode = #tpu.pipeline_mode<synchronous>, transform_indices = @transform_5, window_bounds = array<i64: 32, 32>}, {pipeline_mode = #tpu.pipeline_mode<synchronous>, transform_indices = @transform_6, window_bounds = array<i64: 1, 32>}, {pipeline_mode = #tpu.pipeline_mode<synchronous>, transform_indices = @transform_7, window_bounds = array<i64: 32, 32>}, {pipeline_mode = #tpu.pipeline_mode<synchronous>, transform_indices = @transform_8, window_bounds = array<i64: 1, 32>}, {pipeline_mode = #tpu.pipeline_mode<synchronous>, transform_indices = @transform_9, window_bounds = array<i64: 1, 32>}, {pipeline_mode = #tpu.pipeline_mode<synchronous>, transform_indices = @transform_10, window_bounds = array<i64: 1, 32>}, {pipeline_mode = #tpu.pipeline_mode<synchronous>, transform_indices = @transform_11, window_bounds = array<i64: 32, 64>}, {pipeline_mode = #tpu.pipeline_mode<synchronous>, transform_indices = @transform_12, window_bounds = array<i64: 1, 64>}, {pipeline_mode = #tpu.pipeline_mode<synchronous>, transform_indices = @transform_13, window_bounds = array<i64: 64, 32>}, {pipeline_mode = #tpu.pipeline_mode<synchronous>, transform_indices = @transform_14, window_bounds = array<i64: 1, 32>}, {pipeline_mode = #tpu.pipeline_mode<synchronous>, transform_indices = @transform_15, window_bounds = array<i64: 1, 32>}, {pipeline_mode = #tpu.pipeline_mode<synchronous>, transform_indices = @transform_16, window_bounds = array<i64: 1, 32>}, {transform_indices = @transform_17, window_bounds = array<i64: 1, 8, 32>}, {transform_indices = @transform_18, window_bounds = array<i64: 1, 4, 8, 8>}]} {
    %c0_i32 = arith.constant 0 : i32
    %0 = arith.cmpi eq, %arg1, %c0_i32 : i32
    %1 = arith.extui %0 : i1 to i32
    %c0_i32_0 = arith.constant 0 : i32
    %2 = arith.cmpi ne, %1, %c0_i32_0 : i32
    scf.if %2 {
      %c0_86 = arith.constant 0 : index
      %c0_87 = arith.constant 0 : index
      %c0_88 = arith.constant 0 : index
      %158 = vector.load %arg2[%c0_86, %c0_87, %c0_88] : memref<1x8x32xf32, #tpu.memory_space<vmem>>, vector<1x8x32xf32>
      %159 = vector.shape_cast %158 : vector<1x8x32xf32> to vector<8x32xf32>
      %c0_89 = arith.constant 0 : index
      %c0_90 = arith.constant 0 : index
      %160 = vector.load %arg5[%c0_89, %c0_90] : memref<32x32xf32, #tpu.memory_space<vmem>>, vector<32x32xf32>
      %cst_91 = arith.constant dense<0.000000e+00> : vector<8x32xf32>
      %161 = tpu.matmul %159, %160, %cst_91 {dimension_numbers = #tpu.dot_dimension_numbers<[1], [0], [0], [1], [0, 0, 1, 1], [], []>} : vector<8x32xf32>, vector<32x32xf32>, vector<8x32xf32> -> vector<8x32xf32>
      %c0_92 = arith.constant 0 : index
      %c0_93 = arith.constant 0 : index
      %162 = vector.load %arg6[%c0_92, %c0_93] : memref<1x32xf32, #tpu.memory_space<vmem>>, vector<1x32xf32>
      %163 = vector.broadcast %162 : vector<1x32xf32> to vector<8x32xf32>
      %164 = arith.addf %161, %163 : vector<8x32xf32>
      %c0_94 = arith.constant 0 : index
      %c0_95 = arith.constant 0 : index
      %165 = vector.load %arg7[%c0_94, %c0_95] : memref<32x32xf32, #tpu.memory_space<vmem>>, vector<32x32xf32>
      %cst_96 = arith.constant dense<0.000000e+00> : vector<8x32xf32>
      %166 = tpu.matmul %159, %165, %cst_96 {dimension_numbers = #tpu.dot_dimension_numbers<[1], [0], [0], [1], [0, 0, 1, 1], [], []>} : vector<8x32xf32>, vector<32x32xf32>, vector<8x32xf32> -> vector<8x32xf32>
      %c0_97 = arith.constant 0 : index
      %c0_98 = arith.constant 0 : index
      %167 = vector.load %arg8[%c0_97, %c0_98] : memref<1x32xf32, #tpu.memory_space<vmem>>, vector<1x32xf32>
      %168 = vector.broadcast %167 : vector<1x32xf32> to vector<8x32xf32>
      %169 = arith.addf %166, %168 : vector<8x32xf32>
      %170 = tpu.transpose %164, [1, 0] : vector<8x32xf32> -> vector<32x8xf32>
      %c0_99 = arith.constant 0 : index
      %c0_100 = arith.constant 0 : index
      %171 = vector.load %arg21[%c0_99, %c0_100] : memref<32x8xf32, #tpu.memory_space<vmem>>, vector<32x8xf32>
      tpu.vector_store %arg21[%c0_99, %c0_100], %170 {strides = array<i32>} : memref<32x8xf32, #tpu.memory_space<vmem>>, vector<32x8xf32>,
      %c0_101 = arith.constant 0 : index
      %c0_102 = arith.constant 0 : index
      %172 = vector.load %arg22[%c0_101, %c0_102] : memref<8x32xf32, #tpu.memory_space<vmem>>, vector<8x32xf32>
      tpu.vector_store %arg22[%c0_101, %c0_102], %169 {strides = array<i32>} : memref<8x32xf32, #tpu.memory_space<vmem>>, vector<8x32xf32>,
    } else {
    }
    %c8_i32 = arith.constant 8 : i32
    %3 = arith.muli %arg1, %c8_i32 : i32
    %4 = tpu.assume_multiple %3, 8 : i32
    %c0 = arith.constant 0 : index
    %5 = arith.index_cast %4 : i32 to index
    %c0_1 = arith.constant 0 : index
    %6 = vector.load %arg2[%c0, %5, %c0_1] : memref<1x8x32xf32, #tpu.memory_space<vmem>>, vector<1x8x32xf32>
    %7 = vector.shape_cast %6 : vector<1x8x32xf32> to vector<8x32xf32>
    %c0_2 = arith.constant 0 : index
    %c0_3 = arith.constant 0 : index
    %8 = vector.load %arg3[%c0_2, %c0_3] : memref<32x32xf32, #tpu.memory_space<vmem>>, vector<32x32xf32>
    %cst = arith.constant dense<0.000000e+00> : vector<8x32xf32>
    %9 = tpu.matmul %7, %8, %cst {dimension_numbers = #tpu.dot_dimension_numbers<[1], [0], [0], [1], [0, 0, 1, 1], [], []>} : vector<8x32xf32>, vector<32x32xf32>, vector<8x32xf32> -> vector<8x32xf32>
    %c0_4 = arith.constant 0 : index
    %c0_5 = arith.constant 0 : index
    %10 = vector.load %arg4[%c0_4, %c0_5] : memref<1x32xf32, #tpu.memory_space<vmem>>, vector<1x32xf32>
    %11 = vector.broadcast %10 : vector<1x32xf32> to vector<8x32xf32>
    %12 = arith.addf %9, %11 : vector<8x32xf32>
    %cst_6 = arith.constant 0.353553385 : f32
    %13 = vector.broadcast %cst_6 : f32 to vector<8x32xf32>
    %14 = arith.mulf %12, %13 : vector<8x32xf32>
    %15 = vector.extract_strided_slice %14 {offsets = [0, 0], sizes = [8, 8], strides = [1, 1]} : vector<8x32xf32> to vector<8x8xf32>
    %c0_7 = arith.constant 0 : index
    %c0_8 = arith.constant 0 : index
    %16 = vector.load %arg21[%c0_7, %c0_8] : memref<32x8xf32, #tpu.memory_space<vmem>>, vector<8x8xf32>
    %cst_9 = arith.constant dense<0.000000e+00> : vector<8x8xf32>
    %17 = tpu.matmul %15, %16, %cst_9 {dimension_numbers = #tpu.dot_dimension_numbers<[1], [0], [0], [1], [0, 0, 1, 1], [], []>} : vector<8x8xf32>, vector<8x8xf32>, vector<8x8xf32> -> vector<8x8xf32>
    %cst_10 = arith.constant dense<0xFF800000> : vector<8xf32>
    %18 = vector.multi_reduction <maximumf>, %17, %cst_10 [1] : vector<8x8xf32> to vector<8xf32>
    %19 = vector.shape_cast %18 : vector<8xf32> to vector<8x1xf32>
    %20 = vector.broadcast %19 : vector<8x1xf32> to vector<8x8xf32>
    %21 = arith.subf %17, %20 : vector<8x8xf32>
    %22 = math.exp %21 : vector<8x8xf32>
    %cst_11 = arith.constant dense<0.000000e+00> : vector<8xf32>
    %23 = vector.multi_reduction <add>, %22, %cst_11 [1] : vector<8x8xf32> to vector<8xf32>
    %24 = vector.shape_cast %23 : vector<8xf32> to vector<8x1xf32>
    %25 = tpu.reciprocal %24 {approx = true} : vector<8x1xf32> -> vector<8x1xf32>
    %26 = vector.broadcast %25 : vector<8x1xf32> to vector<8x8xf32>
    %27 = arith.mulf %22, %26 : vector<8x8xf32>
    %c0_12 = arith.constant 0 : index
    %c0_13 = arith.constant 0 : index
    %c0_14 = arith.constant 0 : index
    %c0_15 = arith.constant 0 : index
    %28 = vector.load %arg20[%c0_12, %c0_13, %c0_14, %c0_15] : memref<1x4x8x8xf32, #tpu.memory_space<vmem>>, vector<1x1x8x8xf32>
    %29 = vector.shape_cast %28 : vector<1x1x8x8xf32> to vector<8x8xf32>
    %30 = vector.shape_cast %27 : vector<8x8xf32> to vector<1x1x8x8xf32>
    tpu.vector_store %arg20[%c0_12, %c0_13, %c0_14, %c0_15], %30 {strides = array<i32>} : memref<1x4x8x8xf32, #tpu.memory_space<vmem>>, vector<1x1x8x8xf32>,
    %c0_16 = arith.constant 0 : index
    %c0_17 = arith.constant 0 : index
    %31 = vector.load %arg22[%c0_16, %c0_17] : memref<8x32xf32, #tpu.memory_space<vmem>>, vector<8x8xf32>
    %cst_18 = arith.constant dense<0.000000e+00> : vector<8x8xf32>
    %32 = tpu.matmul %27, %31, %cst_18 {dimension_numbers = #tpu.dot_dimension_numbers<[1], [0], [0], [1], [0, 0, 1, 1], [], []>} : vector<8x8xf32>, vector<8x8xf32>, vector<8x8xf32> -> vector<8x8xf32>
    %33 = vector.extract_strided_slice %14 {offsets = [0, 8], sizes = [8, 8], strides = [1, 1]} : vector<8x32xf32> to vector<8x8xf32>
    %c8 = arith.constant 8 : index
    %c0_19 = arith.constant 0 : index
    %34 = vector.load %arg21[%c8, %c0_19] : memref<32x8xf32, #tpu.memory_space<vmem>>, vector<8x8xf32>
    %cst_20 = arith.constant dense<0.000000e+00> : vector<8x8xf32>
    %35 = tpu.matmul %33, %34, %cst_20 {dimension_numbers = #tpu.dot_dimension_numbers<[1], [0], [0], [1], [0, 0, 1, 1], [], []>} : vector<8x8xf32>, vector<8x8xf32>, vector<8x8xf32> -> vector<8x8xf32>
    %cst_21 = arith.constant dense<0xFF800000> : vector<8xf32>
    %36 = vector.multi_reduction <maximumf>, %35, %cst_21 [1] : vector<8x8xf32> to vector<8xf32>
    %37 = vector.shape_cast %36 : vector<8xf32> to vector<8x1xf32>
    %38 = vector.broadcast %37 : vector<8x1xf32> to vector<8x8xf32>
    %39 = arith.subf %35, %38 : vector<8x8xf32>
    %40 = math.exp %39 : vector<8x8xf32>
    %cst_22 = arith.constant dense<0.000000e+00> : vector<8xf32>
    %41 = vector.multi_reduction <add>, %40, %cst_22 [1] : vector<8x8xf32> to vector<8xf32>
    %42 = vector.shape_cast %41 : vector<8xf32> to vector<8x1xf32>
    %43 = tpu.reciprocal %42 {approx = true} : vector<8x1xf32> -> vector<8x1xf32>
    %44 = vector.broadcast %43 : vector<8x1xf32> to vector<8x8xf32>
    %45 = arith.mulf %40, %44 : vector<8x8xf32>
    %c0_23 = arith.constant 0 : index
    %c1 = arith.constant 1 : index
    %c0_24 = arith.constant 0 : index
    %c0_25 = arith.constant 0 : index
    %46 = vector.load %arg20[%c0_23, %c1, %c0_24, %c0_25] : memref<1x4x8x8xf32, #tpu.memory_space<vmem>>, vector<1x1x8x8xf32>
    %47 = vector.shape_cast %46 : vector<1x1x8x8xf32> to vector<8x8xf32>
    %48 = vector.shape_cast %45 : vector<8x8xf32> to vector<1x1x8x8xf32>
    tpu.vector_store %arg20[%c0_23, %c1, %c0_24, %c0_25], %48 {strides = array<i32>} : memref<1x4x8x8xf32, #tpu.memory_space<vmem>>, vector<1x1x8x8xf32>,
    %c0_26 = arith.constant 0 : index
    %c8_27 = arith.constant 8 : index
    %49 = vector.load %arg22[%c0_26, %c8_27] : memref<8x32xf32, #tpu.memory_space<vmem>>, vector<8x8xf32>
    %cst_28 = arith.constant dense<0.000000e+00> : vector<8x8xf32>
    %50 = tpu.matmul %45, %49, %cst_28 {dimension_numbers = #tpu.dot_dimension_numbers<[1], [0], [0], [1], [0, 0, 1, 1], [], []>} : vector<8x8xf32>, vector<8x8xf32>, vector<8x8xf32> -> vector<8x8xf32>
    %51 = vector.extract_strided_slice %14 {offsets = [0, 16], sizes = [8, 8], strides = [1, 1]} : vector<8x32xf32> to vector<8x8xf32>
    %c16 = arith.constant 16 : index
    %c0_29 = arith.constant 0 : index
    %52 = vector.load %arg21[%c16, %c0_29] : memref<32x8xf32, #tpu.memory_space<vmem>>, vector<8x8xf32>
    %cst_30 = arith.constant dense<0.000000e+00> : vector<8x8xf32>
    %53 = tpu.matmul %51, %52, %cst_30 {dimension_numbers = #tpu.dot_dimension_numbers<[1], [0], [0], [1], [0, 0, 1, 1], [], []>} : vector<8x8xf32>, vector<8x8xf32>, vector<8x8xf32> -> vector<8x8xf32>
    %cst_31 = arith.constant dense<0xFF800000> : vector<8xf32>
    %54 = vector.multi_reduction <maximumf>, %53, %cst_31 [1] : vector<8x8xf32> to vector<8xf32>
    %55 = vector.shape_cast %54 : vector<8xf32> to vector<8x1xf32>
    %56 = vector.broadcast %55 : vector<8x1xf32> to vector<8x8xf32>
    %57 = arith.subf %53, %56 : vector<8x8xf32>
    %58 = math.exp %57 : vector<8x8xf32>
    %cst_32 = arith.constant dense<0.000000e+00> : vector<8xf32>
    %59 = vector.multi_reduction <add>, %58, %cst_32 [1] : vector<8x8xf32> to vector<8xf32>
    %60 = vector.shape_cast %59 : vector<8xf32> to vector<8x1xf32>
    %61 = tpu.reciprocal %60 {approx = true} : vector<8x1xf32> -> vector<8x1xf32>
    %62 = vector.broadcast %61 : vector<8x1xf32> to vector<8x8xf32>
    %63 = arith.mulf %58, %62 : vector<8x8xf32>
    %c0_33 = arith.constant 0 : index
    %c2 = arith.constant 2 : index
    %c0_34 = arith.constant 0 : index
    %c0_35 = arith.constant 0 : index
    %64 = vector.load %arg20[%c0_33, %c2, %c0_34, %c0_35] : memref<1x4x8x8xf32, #tpu.memory_space<vmem>>, vector<1x1x8x8xf32>
    %65 = vector.shape_cast %64 : vector<1x1x8x8xf32> to vector<8x8xf32>
    %66 = vector.shape_cast %63 : vector<8x8xf32> to vector<1x1x8x8xf32>
    tpu.vector_store %arg20[%c0_33, %c2, %c0_34, %c0_35], %66 {strides = array<i32>} : memref<1x4x8x8xf32, #tpu.memory_space<vmem>>, vector<1x1x8x8xf32>,
    %c0_36 = arith.constant 0 : index
    %c16_37 = arith.constant 16 : index
    %67 = vector.load %arg22[%c0_36, %c16_37] : memref<8x32xf32, #tpu.memory_space<vmem>>, vector<8x8xf32>
    %cst_38 = arith.constant dense<0.000000e+00> : vector<8x8xf32>
    %68 = tpu.matmul %63, %67, %cst_38 {dimension_numbers = #tpu.dot_dimension_numbers<[1], [0], [0], [1], [0, 0, 1, 1], [], []>} : vector<8x8xf32>, vector<8x8xf32>, vector<8x8xf32> -> vector<8x8xf32>
    %69 = vector.extract_strided_slice %14 {offsets = [0, 24], sizes = [8, 8], strides = [1, 1]} : vector<8x32xf32> to vector<8x8xf32>
    %c24 = arith.constant 24 : index
    %c0_39 = arith.constant 0 : index
    %70 = vector.load %arg21[%c24, %c0_39] : memref<32x8xf32, #tpu.memory_space<vmem>>, vector<8x8xf32>
    %cst_40 = arith.constant dense<0.000000e+00> : vector<8x8xf32>
    %71 = tpu.matmul %69, %70, %cst_40 {dimension_numbers = #tpu.dot_dimension_numbers<[1], [0], [0], [1], [0, 0, 1, 1], [], []>} : vector<8x8xf32>, vector<8x8xf32>, vector<8x8xf32> -> vector<8x8xf32>
    %cst_41 = arith.constant dense<0xFF800000> : vector<8xf32>
    %72 = vector.multi_reduction <maximumf>, %71, %cst_41 [1] : vector<8x8xf32> to vector<8xf32>
    %73 = vector.shape_cast %72 : vector<8xf32> to vector<8x1xf32>
    %74 = vector.broadcast %73 : vector<8x1xf32> to vector<8x8xf32>
    %75 = arith.subf %71, %74 : vector<8x8xf32>
    %76 = math.exp %75 : vector<8x8xf32>
    %cst_42 = arith.constant dense<0.000000e+00> : vector<8xf32>
    %77 = vector.multi_reduction <add>, %76, %cst_42 [1] : vector<8x8xf32> to vector<8xf32>
    %78 = vector.shape_cast %77 : vector<8xf32> to vector<8x1xf32>
    %79 = tpu.reciprocal %78 {approx = true} : vector<8x1xf32> -> vector<8x1xf32>
    %80 = vector.broadcast %79 : vector<8x1xf32> to vector<8x8xf32>
    %81 = arith.mulf %76, %80 : vector<8x8xf32>
    %c0_43 = arith.constant 0 : index
    %c3 = arith.constant 3 : index
    %c0_44 = arith.constant 0 : index
    %c0_45 = arith.constant 0 : index
    %82 = vector.load %arg20[%c0_43, %c3, %c0_44, %c0_45] : memref<1x4x8x8xf32, #tpu.memory_space<vmem>>, vector<1x1x8x8xf32>
    %83 = vector.shape_cast %82 : vector<1x1x8x8xf32> to vector<8x8xf32>
    %84 = vector.shape_cast %81 : vector<8x8xf32> to vector<1x1x8x8xf32>
    tpu.vector_store %arg20[%c0_43, %c3, %c0_44, %c0_45], %84 {strides = array<i32>} : memref<1x4x8x8xf32, #tpu.memory_space<vmem>>, vector<1x1x8x8xf32>,
    %c0_46 = arith.constant 0 : index
    %c24_47 = arith.constant 24 : index
    %85 = vector.load %arg22[%c0_46, %c24_47] : memref<8x32xf32, #tpu.memory_space<vmem>>, vector<8x8xf32>
    %cst_48 = arith.constant dense<0.000000e+00> : vector<8x8xf32>
    %86 = tpu.matmul %81, %85, %cst_48 {dimension_numbers = #tpu.dot_dimension_numbers<[1], [0], [0], [1], [0, 0, 1, 1], [], []>} : vector<8x8xf32>, vector<8x8xf32>, vector<8x8xf32> -> vector<8x8xf32>
    %87 = tpu.concatenate %32, %50, %68, %86 in 1 : vector<8x8xf32>, vector<8x8xf32>, vector<8x8xf32>, vector<8x8xf32> -> vector<8x32xf32>
    %c0_49 = arith.constant 0 : index
    %c0_50 = arith.constant 0 : index
    %88 = vector.load %arg9[%c0_49, %c0_50] : memref<32x32xf32, #tpu.memory_space<vmem>>, vector<32x32xf32>
    %cst_51 = arith.constant dense<0.000000e+00> : vector<8x32xf32>
    %89 = tpu.matmul %87, %88, %cst_51 {dimension_numbers = #tpu.dot_dimension_numbers<[1], [0], [0], [1], [0, 0, 1, 1], [], []>} : vector<8x32xf32>, vector<32x32xf32>, vector<8x32xf32> -> vector<8x32xf32>
    %c0_52 = arith.constant 0 : index
    %c0_53 = arith.constant 0 : index
    %90 = vector.load %arg10[%c0_52, %c0_53] : memref<1x32xf32, #tpu.memory_space<vmem>>, vector<1x32xf32>
    %91 = vector.broadcast %90 : vector<1x32xf32> to vector<8x32xf32>
    %92 = arith.addf %89, %91 : vector<8x32xf32>
    %93 = arith.addf %92, %7 : vector<8x32xf32>
    %c0_54 = arith.constant 0 : index
    %c0_55 = arith.constant 0 : index
    %94 = vector.load %arg11[%c0_54, %c0_55] : memref<1x32xf32, #tpu.memory_space<vmem>>, vector<1x32xf32>
    %c0_56 = arith.constant 0 : index
    %c0_57 = arith.constant 0 : index
    %95 = vector.load %arg12[%c0_56, %c0_57] : memref<1x32xf32, #tpu.memory_space<vmem>>, vector<1x32xf32>
    %cst_58 = arith.constant dense<0.000000e+00> : vector<8xf32>
    %96 = vector.multi_reduction <add>, %93, %cst_58 [1] : vector<8x32xf32> to vector<8xf32>
    %97 = vector.shape_cast %96 : vector<8xf32> to vector<8x1xf32>
    %cst_59 = arith.constant 3.200000e+01 : f32
    %98 = vector.broadcast %cst_59 : f32 to vector<8x1xf32>
    %99 = arith.divf %97, %98 : vector<8x1xf32>
    %100 = vector.broadcast %99 : vector<8x1xf32> to vector<8x32xf32>
    %101 = arith.subf %93, %100 : vector<8x32xf32>
    %102 = arith.mulf %101, %101 : vector<8x32xf32>
    %cst_60 = arith.constant dense<0.000000e+00> : vector<8xf32>
    %103 = vector.multi_reduction <add>, %102, %cst_60 [1] : vector<8x32xf32> to vector<8xf32>
    %104 = vector.shape_cast %103 : vector<8xf32> to vector<8x1xf32>
    %cst_61 = arith.constant 3.200000e+01 : f32
    %105 = vector.broadcast %cst_61 : f32 to vector<8x1xf32>
    %106 = arith.divf %104, %105 : vector<8x1xf32>
    %107 = vector.broadcast %99 : vector<8x1xf32> to vector<8x32xf32>
    %108 = arith.subf %93, %107 : vector<8x32xf32>
    %cst_62 = arith.constant 9.99999974E-6 : f32
    %109 = vector.broadcast %cst_62 : f32 to vector<8x1xf32>
    %110 = arith.addf %106, %109 : vector<8x1xf32>
    %111 = math.rsqrt %110 : vector<8x1xf32>
    %112 = vector.broadcast %111 : vector<8x1xf32> to vector<8x32xf32>
    %113 = arith.mulf %108, %112 : vector<8x32xf32>
    %114 = vector.broadcast %94 : vector<1x32xf32> to vector<8x32xf32>
    %115 = arith.mulf %113, %114 : vector<8x32xf32>
    %116 = vector.broadcast %95 : vector<1x32xf32> to vector<8x32xf32>
    %117 = arith.addf %115, %116 : vector<8x32xf32>
    %c0_63 = arith.constant 0 : index
    %c0_64 = arith.constant 0 : index
    %118 = vector.load %arg13[%c0_63, %c0_64] : memref<32x64xf32, #tpu.memory_space<vmem>>, vector<32x64xf32>
    %cst_65 = arith.constant dense<0.000000e+00> : vector<8x64xf32>
    %119 = tpu.matmul %117, %118, %cst_65 {dimension_numbers = #tpu.dot_dimension_numbers<[1], [0], [0], [1], [0, 0, 1, 1], [], []>} : vector<8x32xf32>, vector<32x64xf32>, vector<8x64xf32> -> vector<8x64xf32>
    %c0_66 = arith.constant 0 : index
    %c0_67 = arith.constant 0 : index
    %120 = vector.load %arg14[%c0_66, %c0_67] : memref<1x64xf32, #tpu.memory_space<vmem>>, vector<1x64xf32>
    %121 = vector.broadcast %120 : vector<1x64xf32> to vector<8x64xf32>
    %122 = arith.addf %119, %121 : vector<8x64xf32>
    %cst_68 = arith.constant 0.000000e+00 : f32
    %123 = vector.broadcast %cst_68 : f32 to vector<8x64xf32>
    %124 = arith.maximumf %122, %123 : vector<8x64xf32>
    %c0_69 = arith.constant 0 : index
    %c0_70 = arith.constant 0 : index
    %125 = vector.load %arg15[%c0_69, %c0_70] : memref<64x32xf32, #tpu.memory_space<vmem>>, vector<64x32xf32>
    %cst_71 = arith.constant dense<0.000000e+00> : vector<8x32xf32>
    %126 = tpu.matmul %124, %125, %cst_71 {dimension_numbers = #tpu.dot_dimension_numbers<[1], [0], [0], [1], [0, 0, 1, 1], [], []>} : vector<8x64xf32>, vector<64x32xf32>, vector<8x32xf32> -> vector<8x32xf32>
    %c0_72 = arith.constant 0 : index
    %c0_73 = arith.constant 0 : index
    %127 = vector.load %arg16[%c0_72, %c0_73] : memref<1x32xf32, #tpu.memory_space<vmem>>, vector<1x32xf32>
    %128 = vector.broadcast %127 : vector<1x32xf32> to vector<8x32xf32>
    %129 = arith.addf %126, %128 : vector<8x32xf32>
    %130 = arith.addf %117, %129 : vector<8x32xf32>
    %c0_74 = arith.constant 0 : index
    %c0_75 = arith.constant 0 : index
    %131 = vector.load %arg17[%c0_74, %c0_75] : memref<1x32xf32, #tpu.memory_space<vmem>>, vector<1x32xf32>
    %c0_76 = arith.constant 0 : index
    %c0_77 = arith.constant 0 : index
    %132 = vector.load %arg18[%c0_76, %c0_77] : memref<1x32xf32, #tpu.memory_space<vmem>>, vector<1x32xf32>
    %cst_78 = arith.constant dense<0.000000e+00> : vector<8xf32>
    %133 = vector.multi_reduction <add>, %130, %cst_78 [1] : vector<8x32xf32> to vector<8xf32>
    %134 = vector.shape_cast %133 : vector<8xf32> to vector<8x1xf32>
    %cst_79 = arith.constant 3.200000e+01 : f32
    %135 = vector.broadcast %cst_79 : f32 to vector<8x1xf32>
    %136 = arith.divf %134, %135 : vector<8x1xf32>
    %137 = vector.broadcast %136 : vector<8x1xf32> to vector<8x32xf32>
    %138 = arith.subf %130, %137 : vector<8x32xf32>
    %139 = arith.mulf %138, %138 : vector<8x32xf32>
    %cst_80 = arith.constant dense<0.000000e+00> : vector<8xf32>
    %140 = vector.multi_reduction <add>, %139, %cst_80 [1] : vector<8x32xf32> to vector<8xf32>
    %141 = vector.shape_cast %140 : vector<8xf32> to vector<8x1xf32>
    %cst_81 = arith.constant 3.200000e+01 : f32
    %142 = vector.broadcast %cst_81 : f32 to vector<8x1xf32>
    %143 = arith.divf %141, %142 : vector<8x1xf32>
    %144 = vector.broadcast %136 : vector<8x1xf32> to vector<8x32xf32>
    %145 = arith.subf %130, %144 : vector<8x32xf32>
    %cst_82 = arith.constant 9.99999974E-6 : f32
    %146 = vector.broadcast %cst_82 : f32 to vector<8x1xf32>
    %147 = arith.addf %143, %146 : vector<8x1xf32>
    %148 = math.rsqrt %147 : vector<8x1xf32>
    %149 = vector.broadcast %148 : vector<8x1xf32> to vector<8x32xf32>
    %150 = arith.mulf %145, %149 : vector<8x32xf32>
    %151 = vector.broadcast %131 : vector<1x32xf32> to vector<8x32xf32>
    %152 = arith.mulf %150, %151 : vector<8x32xf32>
    %153 = vector.broadcast %132 : vector<1x32xf32> to vector<8x32xf32>
    %154 = arith.addf %152, %153 : vector<8x32xf32>
    %c0_83 = arith.constant 0 : index
    %c0_84 = arith.constant 0 : index
    %c0_85 = arith.constant 0 : index
    %155 = vector.load %arg19[%c0_83, %c0_84, %c0_85] : memref<1x8x32xf32, #tpu.memory_space<vmem>>, vector<1x8x32xf32>
    %156 = vector.shape_cast %155 : vector<1x8x32xf32> to vector<8x32xf32>
    %157 = vector.shape_cast %154 : vector<8x32xf32> to vector<1x8x32xf32>
    tpu.vector_store %arg19[%c0_83, %c0_84, %c0_85], %157 {strides = array<i32>} : memref<1x8x32xf32, #tpu.memory_space<vmem>>, vector<1x8x32xf32>,
    return
  }
  func.func @transform_0(%arg0: i32, %arg1: i32) -> (i32, i32, i32) {
    %c0_i32 = arith.constant 0 : i32
    %c0_i32_0 = arith.constant 0 : i32
    %c0_i32_1 = arith.constant 0 : i32
    return %arg0, %c0_i32, %c0_i32_0 : i32, i32, i32
  }
  func.func @transform_1(%arg0: i32, %arg1: i32) -> (i32, i32) {
    %c0_i32 = arith.constant 0 : i32
    %c0_i32_0 = arith.constant 0 : i32
    %c0_i32_1 = arith.constant 0 : i32
    return %c0_i32, %c0_i32_0 : i32, i32
  }
  func.func @transform_2(%arg0: i32, %arg1: i32) -> (i32, i32) {
    %c0_i32 = arith.constant 0 : i32
    %c0_i32_0 = arith.constant 0 : i32
    %c0_i32_1 = arith.constant 0 : i32
    return %c0_i32, %c0_i32_0 : i32, i32
  }
  func.func @transform_3(%arg0: i32, %arg1: i32) -> (i32, i32) {
    %c0_i32 = arith.constant 0 : i32
    %c0_i32_0 = arith.constant 0 : i32
    %c0_i32_1 = arith.constant 0 : i32
    return %c0_i32, %c0_i32_0 : i32, i32
  }
  func.func @transform_4(%arg0: i32, %arg1: i32) -> (i32, i32) {
    %c0_i32 = arith.constant 0 : i32
    %c0_i32_0 = arith.constant 0 : i32
    %c0_i32_1 = arith.constant 0 : i32
    return %c0_i32, %c0_i32_0 : i32, i32
  }
  func.func @transform_5(%arg0: i32, %arg1: i32) -> (i32, i32) {
    %c0_i32 = arith.constant 0 : i32
    %c0_i32_0 = arith.constant 0 : i32
    %c0_i32_1 = arith.constant 0 : i32
    return %c0_i32, %c0_i32_0 : i32, i32
  }
  func.func @transform_6(%arg0: i32, %arg1: i32) -> (i32, i32) {
    %c0_i32 = arith.constant 0 : i32
    %c0_i32_0 = arith.constant 0 : i32
    %c0_i32_1 = arith.constant 0 : i32
    return %c0_i32, %c0_i32_0 : i32, i32
  }
  func.func @transform_7(%arg0: i32, %arg1: i32) -> (i32, i32) {
    %c0_i32 = arith.constant 0 : i32
    %c0_i32_0 = arith.constant 0 : i32
    %c0_i32_1 = arith.constant 0 : i32
    return %c0_i32, %c0_i32_0 : i32, i32
  }
  func.func @transform_8(%arg0: i32, %arg1: i32) -> (i32, i32) {
    %c0_i32 = arith.constant 0 : i32
    %c0_i32_0 = arith.constant 0 : i32
    %c0_i32_1 = arith.constant 0 : i32
    return %c0_i32, %c0_i32_0 : i32, i32
  }
  func.func @transform_9(%arg0: i32, %arg1: i32) -> (i32, i32) {
    %c0_i32 = arith.constant 0 : i32
    %c0_i32_0 = arith.constant 0 : i32
    %c0_i32_1 = arith.constant 0 : i32
    return %c0_i32, %c0_i32_0 : i32, i32
  }
  func.func @transform_10(%arg0: i32, %arg1: i32) -> (i32, i32) {
    %c0_i32 = arith.constant 0 : i32
    %c0_i32_0 = arith.constant 0 : i32
    %c0_i32_1 = arith.constant 0 : i32
    return %c0_i32, %c0_i32_0 : i32, i32
  }
  func.func @transform_11(%arg0: i32, %arg1: i32) -> (i32, i32) {
    %c0_i32 = arith.constant 0 : i32
    %c0_i32_0 = arith.constant 0 : i32
    %c0_i32_1 = arith.constant 0 : i32
    return %c0_i32, %c0_i32_0 : i32, i32
  }
  func.func @transform_12(%arg0: i32, %arg1: i32) -> (i32, i32) {
    %c0_i32 = arith.constant 0 : i32
    %c0_i32_0 = arith.constant 0 : i32
    %c0_i32_1 = arith.constant 0 : i32
    return %c0_i32, %c0_i32_0 : i32, i32
  }
  func.func @transform_13(%arg0: i32, %arg1: i32) -> (i32, i32) {
    %c0_i32 = arith.constant 0 : i32
    %c0_i32_0 = arith.constant 0 : i32
    %c0_i32_1 = arith.constant 0 : i32
    return %c0_i32, %c0_i32_0 : i32, i32
  }
  func.func @transform_14(%arg0: i32, %arg1: i32) -> (i32, i32) {
    %c0_i32 = arith.constant 0 : i32
    %c0_i32_0 = arith.constant 0 : i32
    %c0_i32_1 = arith.constant 0 : i32
    return %c0_i32, %c0_i32_0 : i32, i32
  }
  func.func @transform_15(%arg0: i32, %arg1: i32) -> (i32, i32) {
    %c0_i32 = arith.constant 0 : i32
    %c0_i32_0 = arith.constant 0 : i32
    %c0_i32_1 = arith.constant 0 : i32
    return %c0_i32, %c0_i32_0 : i32, i32
  }
  func.func @transform_16(%arg0: i32, %arg1: i32) -> (i32, i32) {
    %c0_i32 = arith.constant 0 : i32
    %c0_i32_0 = arith.constant 0 : i32
    %c0_i32_1 = arith.constant 0 : i32
    return %c0_i32, %c0_i32_0 : i32, i32
  }
  func.func @transform_17(%arg0: i32, %arg1: i32) -> (i32, i32, i32) {
    %c0_i32 = arith.constant 0 : i32
    %c0_i32_0 = arith.constant 0 : i32
    return %arg0, %arg1, %c0_i32 : i32, i32, i32
  }
  func.func @transform_18(%arg0: i32, %arg1: i32) -> (i32, i32, i32, i32) {
    %c0_i32 = arith.constant 0 : i32
    %c0_i32_0 = arith.constant 0 : i32
    %c0_i32_1 = arith.constant 0 : i32
    return %arg0, %c0_i32, %arg1, %c0_i32_0 : i32, i32, i32, i32
  }
}

</mosaic_0001>

<bundles_post_ra>
// kernel: tpu_custom_call.1
= control target key start
LH: loop header
LB: loop body
LE: loop exit
PB: predicated region body
PF: predicated region fallthrough
CT: control target
= control target key end

     0   :  { %s3289_s0 = inlined_call_operand.hbm [shape: f32[2,8,32], index: 0, kind: input, shape index: {}]   ;;  %s3290_s1 = inlined_call_operand.vmem [shape: f32[32,32], index: 1, kind: input, shape index: {}]   ;;  %s3291_s2 = inlined_call_operand.vmem [shape: f32[1,32], index: 2, kind: input, shape index: {}]   ;;  %s3292_s3 = inlined_call_operand.vmem [shape: f32[32,32], index: 3, kind: input, shape index: {}]   ;;  %s3293_s4 = inlined_call_operand.vmem [shape: f32[1,32], index: 4, kind: input, shape index: {}]   ;;  %s3294_s5 = inlined_call_operand.vmem [shape: f32[32,32], index: 5, kind: input, shape index: {}]   ;;  %s3295_s6 = inlined_call_operand.vmem [shape: f32[1,32], index: 6, kind: input, shape index: {}]   ;;  %s3296_s7 = inlined_call_operand.hbm [shape: f32[32,32], index: 7, kind: input, shape index: {}]   ;;  %s3297_s8 = inlined_call_operand.vmem [shape: f32[1,32], index: 8, kind: input, shape index: {}]   ;;  %s3298_s9 = inlined_call_operand.vmem [shape: f32[1,32], index: 9, kind: input, shape index: {}]   ;;  %s3299_s10 = inlined_call_operand.vmem [shape: f32[1,32], index: 10, kind: input, shape index: {}]   ;;  %s3300_s11 = inlined_call_operand.hbm [shape: f32[32,64], index: 11, kind: input, shape index: {}]   ;;  %s3301_s12 = inlined_call_operand.vmem [shape: f32[1,64], index: 12, kind: input, shape index: {}]   ;;  %s3302_s13 = inlined_call_operand.vmem [shape: f32[64,32], index: 13, kind: input, shape index: {}]   ;;  %s3303_s14 = inlined_call_operand.vmem [shape: f32[1,32], index: 14, kind: input, shape index: {}]   ;;  %s3304_s15 = inlined_call_operand.vmem [shape: f32[1,32], index: 15, kind: input, shape index: {}]   ;;  %s3305_s16 = inlined_call_operand.vmem [shape: f32[1,32], index: 16, kind: input, shape index: {}]   ;;  %s3306_s17 = inlined_call_operand.hbm [shape: f32[2,8,32], index: 17, kind: output, shape index: {0}]   ;;  %s3307_s18 = inlined_call_operand.hbm [shape: f32[2,4,8,8], index: 18, kind: output, shape index: {1}]  }
   0x1   :  { %3321 = sst [smem:[#allocation20_spill]] %s3289_s0 }
   0x2   :  { %3322 = sst [smem:[#allocation21_spill]] %s3290_s1 }
   0x3   :  { %3323 = sst [smem:[#allocation22_spill]] %s3291_s2 }
   0x4   :  { %3324 = sst [smem:[#allocation23_spill]] %s3292_s3 }
   0x5   :  { %3325 = sst [smem:[#allocation24_spill]] %s3293_s4 }
   0x6   :  { %3326 = sst [smem:[#allocation25_spill]] %s3294_s5 }
   0x7   :  { %3327 = sst [smem:[#allocation26_spill]] %s3295_s6 }
   0x8   :  { %3328 = sst [smem:[#allocation27_spill]] %s3299_s10 }
   0x9   :  { %3329 = sst [smem:[#allocation28_spill]] %s3301_s12 }
   0xa   :  { %3330 = sst [smem:[#allocation29_spill]] %s3303_s14 }
   0xb   :  { %3331 = sst [smem:[#allocation30_spill]] %s3304_s15 }
   0xc   :  { %3332 = sst [smem:[#allocation31_spill]] %s3305_s16 }
   0xd   :  { %3333 = sst [smem:[#allocation32_spill]] %s3306_s17 }
   0xe   :  { %3334 = sst [smem:[#allocation33_spill]] %s3307_s18 }
   0xf   :  { %24 = vsyncpa [#allocation5], 0 }
  0x10   :  { %26 = vsyncpa [#allocation5 + $0x1], 0 }
  0x11   :  { %27 = vsyncpa [#allocation8], 0 }
  0x12   :  { %28 = vsyncpa [#allocation6], 0 }
  0x13   :  { %30 = vsyncpa [#allocation6 + $0x1], 0 }
  0x14   :  { %31 = vsyncpa [#allocation12], 0 }
  0x15   :  { %33 = vsyncpa [#allocation12 + $0x1], 0  ;;  %s2805_s27 = smov 0   ;;  %s2807_s28 = smov 0  }
  0x16   :  { %s2809_s29 = smov 0   ;;  %s2811_s30 = smov 0  }
  0x17   :  { %s2813_s0 = smov 0   ;;  %s2815_s19 = smov 0  }
  0x18 LB: > { %3335 = sst [smem:[#allocation17_spill]] %s2671_s27  ;;  %s2112_s1 = sadd.s32 4294967295, %s2691_s19   ;;  %s2691_s19 = sphi %s2815_s19, %s39_s19   ;;  %s2687_s0 = sphi %s2813_s0, %s3376_s0   ;;  %s2683_s30 = sphi %s2811_s30, %s3375_s30   ;;  %s2679_s29 = sphi %s2809_s29, %s3374_s29   ;;  %s2675_s28 = sphi %s2807_s28, %s3373_s28   ;;  %s2671_s27 = sphi %s2805_s27, %s3372_s27  }
  0x19   : > { %3336 = sst [smem:[#allocation18_spill]] %s2683_s30  ;;  %s2113_s20 = sadd.s32 4294967294, %s2691_s19  }
  0x1a   : > { %p71_p0 = scmp.ne.s32.totalorder %s2675_s28, %s2671_s27  ;;  %p2839_p1 = scmp.eq.s32.totalorder %s2112_s1, 0 }
  0x1b   : > { %p2843_p2 = scmp.eq.s32.totalorder %s2112_s1, 1  ;;  %p439_p3 = scmp.eq.s32.totalorder %s2113_s20, 1 }
  0x1c   : > { %s3337_s21 = scalar_select %p2839_p1, 1, 0 }
  0x1d   : > { %p2849_p4 = por %p2839_p1, %p71_p0  ;;  %p2114_p5 = scmp.ge.s32.totalorder %s2691_s19, 1 }
  0x1e   : > { %p2854_p6 = por %p439_p3, %p71_p0  ;;  %p474_p7 = scmp.lt.s32.totalorder %s2691_s19, 3 }
  0x1f   : > { %s3339_s2 = scalar_select %p2849_p4, 1, 0 }
  0x20   : > { %s3340_s23 = scalar_select %p2854_p6, 1, 0 }
  0x21   : > { %p2859_p8 = pnand %p2114_p5, %p474_p7  ;;  %s2693_s25 = smov [#allocation7]  }
  0x22   : > { %3341 = sst [smem:[#allocation19_spill]] %s3340_s23  ;;  %s504_s26 = sshll.u32 %s2693_s25, 4  ;;  %s2863_s26 = int_to_ptr.vmem [resolvable:$true] %s504_s26 }
  0x23   : > { %p2381_p9 = pneg %p2859_p8  ;;  %s2694_s20 = smov [#allocation9]  }
  0x24   : > { %s526_s23 = sshll.u32 %s2694_s20, 4  ;;  %s2487_s25 = scalar_lea.hbm %s3296_s7, 512  ;;  %s2874_s23 = int_to_ptr.vmem [resolvable:$true] %s526_s23 }
  0x25   : > { %p2870_p11 = pnand %p2381_p9, %p2839_p1  ;;  %p2488_p12 = scmp.ne.s32.totalorder %s3296_s7, %s2487_s25 }
  0x26   : > { %p2494_p5 = scmp.lt.u32.totalorder %s2487_s25, %s3296_s7 }
  0x27   : > { %p2489_p13 = pneg %p2870_p11 }
  0x29   : > { %p2490_p0 = pnand %p2489_p13, %p2488_p12 }
  0x2b   : > { %p2491_p3 = pneg %p2490_p0 }
  0x2d   : > { %p2496_p7 = pnand %p2494_p5, %p2491_p3 }
  0x2f   : > { %2499 = shalt.err (!%p2496_p7)
}
  0x30   : > { %s2500_s17 = scalar_lea.vmem %s2863_s26, 512  ;;  %p2508_p1 = scmp.lt.s32.totalorder %s2863_s26, %s2863_s26 }
  0x31   : > { %p2501_p9 = scmp.ne.s32.totalorder %s2863_s26, %s2500_s17  ;;  %p2509_p12 = scmp.lt.s32.totalorder %s2500_s17, %s2500_s17 }
  0x33   : > { %p2503_p10 = pnand %p2501_p9, %p2489_p13  ;;  %p2510_p0 = por %p2509_p12, %p2508_p1 }
  0x35   : > { %p2504_p6 = pneg %p2503_p10 }
  0x37   : > { %p2511_p4 = pnand %p2510_p0, %p2504_p6 }
  0x39   : > { %2514 = shalt.err (!%p2511_p4)
}
  0x3a   : > { %s2695_s14 = smov 128   ;;  %s2696_s15 = smov 8  }
  0x3b   : > { %2384 = dma.hbm_to_vmem [thread:$0]  (!%p2870_p11), %s3296_s7, 512, %s2863_s26, [#allocation8], %s2695_s14, %s2695_s14, %s2696_s15  }
  0x3c   : > { %s2515_s25 = scalar_lea.hbm %s3300_s11, 512 }
  0x3d   : > { %p2516_p1 = scmp.ne.s32.totalorder %s3300_s11, %s2515_s25  ;;  %p2522_p10 = scmp.lt.u32.totalorder %s2515_s25, %s3300_s11 }
  0x3f   : > { %p2518_p4 = pnand %p2516_p1, %p2489_p13 }
  0x41   : > { %p2519_p6 = pneg %p2518_p4 }
  0x43   : > { %p2524_p3 = pnand %p2522_p10, %p2519_p6 }
  0x45   : > { %2527 = shalt.err (!%p2524_p3)
}
  0x46   : > { %s2528_s26 = scalar_lea.vmem %s2874_s23, 512  ;;  %p2536_p12 = scmp.lt.s32.totalorder %s2874_s23, %s2874_s23 }
  0x47   : > { %p2529_p5 = scmp.ne.s32.totalorder %s2874_s23, %s2528_s26  ;;  %p2537_p0 = scmp.lt.s32.totalorder %s2528_s26, %s2528_s26 }
  0x49   : > { %p2531_p7 = pnand %p2529_p5, %p2489_p13  ;;  %p2538_p1 = por %p2537_p0, %p2536_p12 }
  0x4b   : > { %p2532_p9 = pneg %p2531_p7 }
  0x4d   : > { %p2539_p4 = pnand %p2538_p1, %p2532_p9 }
  0x4f   : > { %2542 = shalt.err (!%p2539_p4)
}
  0x50   : > { %2387 = dma.hbm_to_vmem [thread:$0]  (!%p2870_p11), %s3300_s11, 512, %s2874_s23, [#allocation8], %s2695_s14, %s2695_s14, %s2696_s15  }
  0x51   : > { %s51_s30 = sadd.s32 1, %s2687_s0  ;;  %s58_s16 = sadd.s32 1, %s2679_s29 }
  0x52   : > { %p53_p13 = scmp.ge.s32.totalorder %s51_s30, 2  ;;  %p65_p6 = scmp.ne.s32.totalorder %s2679_s29, %s2675_s28 }
  0x53   : > { %p66_p10 = scmp.eq.s32.totalorder %s2691_s19, 0  ;;  %p2401_p3 = scmp.lt.s32.totalorder %s2691_s19, 2 }
  0x54   : > { %s3378_s30 = smov (%p53_p13, %s51_s30), 0  ;;  %p2938_p7 = por %p2843_p2, %p65_p6 }
  0x55   : > { %p67_p5 = por %p66_p10, %p65_p6  ;;  %s55_s18 = ssub.s32 %s2687_s0, %s3378_s30 }
  0x56   : > { %s3344_s1 = scalar_select %p2938_p7, 1, 0 }
  0x57   : > { %s555_s27 = sand.u32 1, %s2679_s29   ;;  %p56_p9 = scmp.eq.s32.totalorder %s55_s18, 0 }
  0x58   : > { %s2118_s23 = sshll.u32 %s555_s27, 3  ;;  %s2119_s14 = sshll.u32 %s2687_s0, 7 }
  0x59   : > { %s2947_s15 = scalar_select %p56_p9, %s2679_s29, %s58_s16  }
  0x5a   : > { %s3345_s17 = sld [smem:[#allocation20_spill]]  ;;  %s559_s22 = scalar_lea.vmem [#allocation4], %s2118_s23 }
  0x5b   : > { %s566_s10 = sshll.u32 %s559_s22, 4  ;;  %p2956_p2 = pnand %p2401_p3, %p67_p5  ;;  %s2960_s10 = int_to_ptr.vmem [resolvable:$true] %s566_s10 }
  0x5c   : > { %s556_s16 = scalar_lea.sflag [#allocation5], %s555_s27 }
  0x5d   : > { %p2545_p12 = pneg %p2956_p2 }
  0x60   : > { %s2952_s26 = scalar_lea.hbm %s3345_s17, %s2119_s14  ;;  %s2548_s20 = scalar_lea.hbm %s3345_s17, 256 }
  0x61   : > { %s2543_s18 = scalar_lea.hbm %s2952_s26, 128  ;;  %p2549_p4 = scmp.lt.u32.totalorder %s2952_s26, %s3345_s17 }
  0x62   : > { %p2544_p11 = scmp.ne.s32.totalorder %s2952_s26, %s2543_s18  ;;  %p2550_p13 = scmp.lt.u32.totalorder %s2548_s20, %s2543_s18 }
  0x63   : > { %p2552_p10 = scmp.lt.u32.totalorder %s2543_s18, %s2952_s26 }
  0x64   : > { %p2546_p0 = pnand %p2545_p12, %p2544_p11  ;;  %p2551_p6 = por %p2550_p13, %p2549_p4 }
  0x66   : > { %p2547_p1 = pneg %p2546_p0  ;;  %p2553_p3 = por %p2552_p10, %p2551_p6 }
  0x68   : > { %p2554_p5 = pnand %p2553_p3, %p2547_p1 }
  0x6a   : > { %2557 = shalt.err (!%p2554_p5)
}
  0x6b   : > { %s2558_s27 = scalar_lea.vmem %s2960_s10, 128  ;;  %s2697_s23 = smov [#allocation4]  }
  0x6c   : > { %p2559_p9 = scmp.ne.s32.totalorder %s2960_s10, %s2558_s27  ;;  %s2563_s14 = sshll.u32 %s2697_s23, 4  ;;  %s2564_s14 = int_to_ptr.vmem [resolvable:$false] %s2563_s14 }
  0x6d   : > { %s2565_s25 = scalar_lea.vmem %s2564_s14, 256  ;;  %p2566_p7 = scmp.lt.s32.totalorder %s2960_s10, %s2564_s14 }
  0x6e   : > { %p2561_p11 = pnand %p2559_p9, %p2545_p12  ;;  %p2567_p4 = scmp.lt.s32.totalorder %s2565_s25, %s2558_s27 }
  0x70   : > { %p2562_p0 = pneg %p2561_p11  ;;  %p2568_p13 = por %p2567_p4, %p2566_p7 }
  0x72   : > { %p2569_p6 = pnand %p2568_p13, %p2562_p0 }
  0x74   : > { %2572 = shalt.err (!%p2569_p6)
}
  0x75   : > { %2391 = dma.hbm_to_vmem [thread:$0]  (!%p2956_p2), %s2952_s26, 128, %s2960_s10, %s556_s16  }
  0x76   : > { %575 = sbr.rel (%p2859_p8) target bundleno = 2694 (0xa86), region = 88  ;;  %s2990_s18 = sand.u32 (!%p2859_p8), 1, %s2675_s28  }
  0x77   : > { %s3319_s20 = sshll.u32 (!%p2859_p8), %s2990_s18, 3  ;;  %s578_s22 = scalar_lea.sflag (!%p2859_p8), [#allocation5], %s2990_s18 }
  0x78   : > { %s581_s27 = scalar_lea.vmem (!%p2859_p8), [#allocation4], %s3319_s20  ;;  %p3347_p7 = scmp.ne.s32.totalorder (!%p2859_p8), %s3339_s2, 0 }
  0x7d   : > { %2654 = dma.done.wait (%p3347_p7), %s578_s22, 128  }
  0x7e   : > { %2656 = vsyncadd (%p3347_p7), %s578_s22, 4294967168  ;;  %p3348_p2 = scmp.ne.s32.totalorder %s3337_s21, 0 }
  0x80   : > { %2658 = dma.done.wait (%p3348_p2), [#allocation8], 1024  }
  0x81   : > { %2660 = vsyncadd (%p3348_p2), [#allocation8], 4294966272  ;;  %v2698_v0 = vmov 0.0|0.0   ;;  %vm2699_vm0 = vmmov 0   ;;  %v2700_v1 = vmov 0.0   ;;  %s3349_s26 = sld [smem:[#allocation21_spill]] }
  0x82   : > { %2337 = vmatprep.subr.bf16.mxu0 %v2698_v0  ;;  %2241 = vmatprep.mubr.msk.f32.mxu0 %vm2699_vm0, %v2700_v1  ;;  %s3350_s3 = sld [smem:[#allocation23_spill]]  ;;  %vm663_vm1 = vcmask 261120   ;;  %v3036_v14 = vld [vmem:[%s581_s27] sm:$0xff]  ;;  %s3351_s5 = sld [smem:[#allocation25_spill]]  ;;  %vm850_vm2 = vcmask 64512   ;;  %vm1617_vm3 = vcmask 130048  }
  0x83   : > { %2325 = vmatprep.subr.bf16.mxu1 %v2698_v0  ;;  %2219 = vmatprep.mubr.msk.f32.mxu1 %vm2699_vm0, %v2700_v1  ;;  %s3352_s22 = sld [smem:[#allocation22_spill]]  ;;  %s2701_s2 = smov 104   ;;  %vm1619_vm4 = vcmask 195584   ;;  %vm1836_vm5 = vcmask 523264  }
  0x84   : > { %s2702_s24 = smov 120   ;;  %s2703_s10 = smov 112  }
  0x85   : > { %s3353_s4 = sld [smem:[#allocation24_spill]]  ;;  %s3354_s6 = sld [smem:[#allocation26_spill]] }
  0x86   : > { %s2706_s21 = smov 24   ;;  %s3356_s14 = sld [smem:[#allocation28_spill]] }
  0x87   : > { %v859_v2 = vld [vmem:[%s3349_s26] sm:$0xff]  ;;  %v860_v3 = vld [vmem:[%s3349_s26 + $0x8] sm:$0xff]  ;;  %v861_v4 = vld [vmem:[%s3349_s26 + $0x10] sm:$0xff]  ;;  %s3357_s25 = sld [smem:[#allocation18_spill]]  ;;  %s3359_s23 = sld [smem:[#allocation33_spill]] }
  0x88   : > { %v2338_v5 = vpack.c.bf16 %v860_v3, %v859_v2  ;;  %v862_v6 = vld [vmem:[%s3349_s26 + $0x18] sm:$0xff]  ;;  %v652_v7 = vld [vmem:[%s3350_s3] sm:$0xff]  ;;  %v653_v8 = vld [vmem:[%s3350_s3 + $0x8] sm:$0xff]  ;;  %p3360_p12 = scmp.ne.s32.totalorder %s3344_s1, 0 }
  0x89   : > { %v654_v9 = vld [vmem:[%s3350_s3 + $0x10] sm:$0xff]  ;;  %v655_v10 = vld [vmem:[%s3350_s3 + $0x18] sm:$0xff]  ;;  %v2341_v11 = vpack.c.bf16 %v862_v6, %v861_v4  ;;  %v2326_v12 = vpack.c.bf16 %v653_v8, %v652_v7  ;;  %v737_v15 = vld [vmem:[%s3351_s5] sm:$0xff] }
  0x8a   : > { %2339 = vmatpush3.bf16.msra.mxu0 %v2338_v5  ;;  %v2329_v13 = vpack.c.bf16 %v655_v10, %v654_v9  ;;  %v738_v16 = vld [vmem:[%s3351_s5 + $0x8] sm:$0xff]  ;;  %v2130_v18 = vld [vmem:[%s3352_s22] ss:$0 sm:$0xff]  ;;  %v739_v27 = vld [vmem:[%s3351_s5 + $0x10] sm:$0xff]  ;;  %s2125_s22 = sshll.u32 %s2990_s18, 5 }
  0x8b   : > { %2340 = vmatprep.subr.bf16.mxu0 %v2698_v0  ;;  %2327 = vmatpush3.bf16.msra.mxu1 %v2326_v12  ;;  %v2332_v17 = vpack.c.bf16 %v738_v16, %v737_v15  ;;  %v2126_v25 = vld [vmem:[%s3353_s4] ss:$0 sm:$0xff]  ;;  %v740_v28 = vld [vmem:[%s3351_s5 + $0x18] sm:$0xff] }
  0x8c   : > { %2328 = vmatprep.subr.bf16.mxu1 %v2698_v0  ;;  %v2335_v29 = vpack.c.bf16 %v740_v28, %v739_v27  ;;  %v2128_v41 = vld [vmem:[%s3354_s6] ss:$0 sm:$0xff] }
  0x8d   : > { %s2160_s12 = sshll.u32 %s3357_s25, 9 }
  0x8e   : > { %2342 = vmatpush3.bf16.msra.mxu0 %v2341_v11 }
  0x8f   : > { %2254 = vmatprep.subr.mxu0 %v2700_v1  ;;  %2330 = vmatpush3.bf16.msra.mxu1 %v2329_v13 }
  0x90   : > { %2331 = vmatprep.subr.bf16.mxu1 %v2698_v0 }
  0x91   : > { %2242 = vmatmul.mubr.msk.f32.vlgmr.msra.gmra.mrb[0].mxu0 %vm663_vm1, %v3036_v14 }
  0x92   : > { %2256 = vmatprep.mubr.msk.f32.mxu0 %vm2699_vm0, %v2700_v1  ;;  %2220 = vmatmul.mubr.msk.f32.vlgmr.msra.gmra.mrb[0].mxu1 %vm663_vm1, %v3036_v14 }
  0x93   : > { %2230 = vmatprep.mubr.msk.f32.mxu1 %vm2699_vm0, %v2700_v1  ;;  %2333 = vmatpush3.bf16.msra.mxu1 %v2332_v17 }
  0x94   : > { %2334 = vmatprep.subr.bf16.mxu1 %v2698_v0 }
  0x97   : > { %2336 = vmatpush3.bf16.msra.mxu1 %v2335_v29 }
  0x98   : > { %2244 = vmatprep.subr.mxu1 %v2700_v1 }
  0x9a   : > { %2231 = vmatmul.mubr.msk.f32.vlgmr.msra.gmra.mrb[2].mxu1 %vm663_vm1, %v3036_v14 }
  0x9b   : > { %2246 = vmatprep.mubr.msk.f32.mxu1 %vm2699_vm0, %v2700_v1 }
 0x164   : > { %v940_v19 = vpop.f32.mrb[0].mxu0 }
 0x165   : > { %v941_v20 = vadd.f32 %v2130_v18, %v940_v19  ;;  %v2243_v21 = vpop.f32.mrb[1].mxu0  ;;  %v733_v22 = vpop.f32.mrb[0].mxu1 }
 0x166   : > { %v2221_v24 = vpop.f32.mrb[1].mxu1  ;;  %v734_v26 = vadd.f32 %v2126_v25, %v733_v22 }
 0x167   : > { %v944_v23 = vmul.f32 0.35355338, %v941_v20 }
 0x169   : > { %1439 = vrot.lane.b32.xlu1 %v944_v23, %s2701_s2  ;;  %1107 = vrot.lane.b32.xlu0 %v944_v23, %s2702_s24 }
 0x16d   : > { %1273 = vrot.lane.b32.xlu0 %v944_v23, %s2703_s10  ;;  %v814_v42 = vpop.f32.mrb[2].mxu1 }
 0x16e   : > { %v815_v43 = vadd.f32 %v2128_v41, %v814_v42  ;;  %v2232_v44 = vpop.f32.mrb[3].mxu1 }
 0x170   : > { %855 = vst.msk [vmem:[#allocation3] sm:$0xff] %vm663_vm1, %v815_v43 }
 0x177   : > { %v1032_v45 = vld [vmem:[#allocation3] sm:$0xff] }
 0x192   : > { %818 = vxpose.xlu1.b32.start.end [1/1] (short) (narrow) %v734_v26, 32 }
 0x1db   : > { %v1440_v30 = vpop.permute.xlu1 %1439  ;;  %v1108_v35 = vpop.permute.xlu0 %1107 }
 0x1df   : > { %v1274_v39 = vpop.permute.xlu0 %1273 }
 0x212   : > { %v834_v31 = vpop.trf.xlu1 }
 0x213   : > { %851 = vst.msk [vmem:[#allocation2] sm:$0xff] %vm850_vm2, %v834_v31 }
 0x216   : > { %v835_v32 = vpop.trf.xlu1 }
 0x217   : > { %852 = vst.msk [vmem:[#allocation2 + $0x8] sm:$0xff] %vm850_vm2, %v835_v32  ;;  %v1621_v32 = vld [vmem:[#allocation7] sm:$0xff] }
 0x21a   : > { %v836_v33 = vpop.trf.xlu1  ;;  %v945_v34 = vld [vmem:[#allocation2] sm:$0xff] }
 0x21b   : > { %853 = vst.msk [vmem:[#allocation2 + $0x10] sm:$0xff] %vm850_vm2, %v836_v33  ;;  %2245 = vmatpush3.msra.mxu1 %v945_v34  ;;  %v1622_v33 = vld [vmem:[#allocation7 + $0x8] sm:$0xff] }
 0x21c   : > { %2247 = vmatmul.mubr.msk.f32.vlgmr.msra.gmra.mrb[4].mxu1 %vm850_vm2, %v944_v23  ;;  %2249 = vmatprep.subr.mxu1 %v2700_v1  ;;  %v2344_v34 = vpack.c.bf16 %v1622_v33, %v1621_v32 }
 0x21d   : > { %2251 = vmatprep.mubr.msk.f32.mxu1 %vm2699_vm0, %v2700_v1  ;;  %2250 = vmatpush3.msra.mxu1 %v1032_v45 }
 0x21e   : > { %v837_v36 = vpop.trf.xlu1  ;;  %v1106_v37 = vld [vmem:[#allocation2 + $0x8] sm:$0xff]  ;;  %2259 = vmatprep.subr.mxu1 %v2700_v1 }
 0x21f   : > { %854 = vst.msk [vmem:[#allocation2 + $0x18] sm:$0xff] %vm850_vm2, %v837_v36  ;;  %2255 = vmatpush3.msra.mxu0 %v1106_v37  ;;  %v1624_v36 = vld [vmem:[#allocation7 + $0x18] sm:$0xff] }
 0x220   : > { %2257 = vmatmul.mubr.msk.f32.vlgmr.msra.gmra.mrb[2].mxu0 %vm850_vm2, %v1108_v35  ;;  %2264 = vmatprep.subr.mxu0 %v2700_v1  ;;  %v1623_v35 = vld [vmem:[#allocation7 + $0x10] sm:$0xff] }
 0x221   : > { %2266 = vmatprep.mubr.msk.f32.mxu0 %vm2699_vm0, %v2700_v1  ;;  %v2347_v37 = vpack.c.bf16 %v1624_v36, %v1623_v35 }
 0x222   : > { %v1272_v38 = vld [vmem:[#allocation2 + $0x10] sm:$0xff] }
 0x223   : > { %2265 = vmatpush3.msra.mxu0 %v1272_v38 }
 0x224   : > { %2267 = vmatmul.mubr.msk.f32.vlgmr.msra.gmra.mrb[4].mxu0 %vm850_vm2, %v1274_v39  ;;  %2274 = vmatprep.subr.mxu0 %v2700_v1 }
 0x225   : > { %2276 = vmatprep.mubr.msk.f32.mxu0 %vm2699_vm0, %v2700_v1 }
 0x226   : > { %v1438_v40 = vld [vmem:[#allocation2 + $0x18] sm:$0xff] }
 0x227   : > { %2275 = vmatpush3.msra.mxu0 %v1438_v40 }
 0x228   : > { %2277 = vmatmul.mubr.msk.f32.vlgmr.msra.gmra.mrb[6].mxu0 %vm850_vm2, %v1440_v30  ;;  %2343 = vmatprep.subr.bf16.mxu0 %v2698_v0 }
 0x229   : > { %2292 = vmatprep.mubr.msk.f32.mxu0 %vm2699_vm0, %v2700_v1  ;;  %2345 = vmatpush3.bf16.msra.mxu0 %v2344_v34 }
 0x22a   : > { %2346 = vmatprep.subr.bf16.mxu0 %v2698_v0 }
 0x22d   : > { %2348 = vmatpush3.bf16.msra.mxu0 %v2347_v37 }
 0x22e   : > { %2355 = vmatprep.subr.bf16.mxu0 %v2698_v0 }
 0x2ef   : > { %v1016_v46 = vpop.f32.mrb[4].mxu1 }
 0x2f0   : > { %v2248_v47 = vpop.f32.mrb[5].mxu1  ;;  %v1020_v48 = vsel %vm850_vm2, %v1016_v46, -inf }
 0x2f1   : > { %1021 = vmax.xlane.f32.xlu0 %v1020_v48 }
 0x2f3   : > { %v1177_v49 = vpop.f32.mrb[2].mxu0 }
 0x2f4   : > { %v2258_v50 = vpop.f32.mrb[3].mxu0  ;;  %v1181_v51 = vsel %vm850_vm2, %v1177_v49, -inf }
 0x2f5   : > { %1182 = vmax.xlane.f32.xlu0 %v1181_v51 }
 0x2f7   : > { %v1343_v52 = vpop.f32.mrb[4].mxu0 }
 0x2f8   : > { %v2268_v53 = vpop.f32.mrb[5].mxu0  ;;  %v1347_v54 = vsel %vm850_vm2, %v1343_v52, -inf }
 0x2f9   : > { %1348 = vmax.xlane.f32.xlu0 %v1347_v54 }
 0x2fb   : > { %v1509_v55 = vpop.f32.mrb[6].mxu0 }
 0x2fc   : > { %v2278_v56 = vpop.f32.mrb[7].mxu0  ;;  %v1513_v57 = vsel %vm850_vm2, %v1509_v55, -inf }
 0x2fd   : > { %1514 = vmax.xlane.f32.xlu1 %v1513_v57 }
 0x30f   : > { %1196 = vrot.lane.b32.xlu0 %v1032_v45, %s2702_s24  ;;  %s3112_s24 = scalar_lea.vmem [#allocation11], %s2125_s22 }
 0x310   : > { %s1975_s20 = sshll.u32 %s3112_s24, 4  ;;  %s3200_s20 = int_to_ptr.vmem [resolvable:$true] %s1975_s20 }
 0x313   : > { %1362 = vrot.lane.b32.xlu0 %v1032_v45, %s2703_s10  ;;  %s2705_s10 = smov 16  }
 0x37e   : > { %v1022_v58 = vpop.xlane.xlu0 %1021 }
 0x37f   : > { %v1023_v59 = vsub.f32 %v1016_v46, %v1022_v58 }
 0x381   : > { %v1024_v60 = vmul.f32 1.442695, %v1023_v59 }
 0x382   : > { %v1183_v61 = vpop.xlane.xlu0 %1182 }
 0x383   : > { %2467 = vpow2.f32 %v1024_v60  ;;  %v1184_v62 = vsub.f32 %v1177_v49, %v1183_v61 }
 0x385   : > { %v1185_v63 = vmul.f32 1.442695, %v1184_v62 }
 0x386   : > { %v1349_v2 = vpop.xlane.xlu0 %1348 }
 0x387   : > { %2469 = vpow2.f32 %v1185_v63  ;;  %v1350_v3 = vsub.f32 %v1343_v52, %v1349_v2  ;;  %v2143_v52 = vld [vmem:[%s3297_s8] ss:$0 sm:$0xff] }
 0x388   : > { %v1737_v63 = vld [vmem:[#allocation9 + $0x8] sm:$0xff] }
 0x389   : > { %v1351_v4 = vmul.f32 1.442695, %v1350_v3  ;;  %v1738_v3 = vld [vmem:[#allocation9 + $0x10] sm:$0xff] }
 0x38a   : > { %v1515_v5 = vpop.xlane.xlu1 %1514  ;;  %v1197_v17 = vpop.permute.xlu0 %1196 }
 0x38b   : > { %2471 = vpow2.f32 %v1351_v4  ;;  %v1516_v6 = vsub.f32 %v1509_v55, %v1515_v5  ;;  %v1739_v4 = vld [vmem:[#allocation9 + $0x18] sm:$0xff] }
 0x38c   : > { %v2353_v5 = vpack.c.bf16 %v1739_v4, %v1738_v3 }
 0x38d   : > { %v2468_v7 = vpop.eup %2467  ;;  %v1517_v8 = vmul.f32 1.442695, %v1516_v6  ;;  %v1822_v6 = vld [vmem:[%s3302_s13 + $0x8] sm:$0xff] }
 0x38e   : > { %v1026_v9 = vsel %vm850_vm2, %v2468_v7, 0.0  ;;  %v1363_v18 = vpop.permute.xlu0 %1362 }
 0x38f   : > { %2473 = vpow2.f32 %v1517_v8  ;;  %1027 = vadd.xlane.f32.xlu0 %v1026_v9  ;;  %v1824_v9 = vld [vmem:[%s3302_s13 + $0x18] sm:$0xff] }
 0x391   : > { %v2470_v10 = vpop.eup %2469 }
 0x392   : > { %v1187_v11 = vsel %vm850_vm2, %v2470_v10, 0.0 }
 0x393   : > { %1188 = vadd.xlane.f32.xlu0 %v1187_v11  ;;  %v1825_v11 = vld [vmem:[%s3302_s13 + $0x20] sm:$0xff] }
 0x395   : > { %v2472_v12 = vpop.eup %2471 }
 0x396   : > { %v1353_v13 = vsel %vm850_vm2, %v2472_v12, 0.0 }
 0x397   : > { %1354 = vadd.xlane.f32.xlu0 %v1353_v13 }
 0x399   : > { %v2474_v15 = vpop.eup %2473 }
 0x39a   : > { %v1519_v16 = vsel %vm850_vm2, %v2474_v15, 0.0 }
 0x39b   : > { %1520 = vadd.xlane.f32.xlu0 %v1519_v16 }
 0x3b1   : > { %1528 = vrot.lane.b32.xlu0 %v1032_v45, %s2701_s2  ;;  %s3320_s2 = smov 8  }
 0x41c   : > { %v1028_v19 = vpop.xlane.xlu0 %1027 }
 0x41d   : > { %2475 = vrcp.f32 %v1028_v19  ;;  %v2145_v19 = vld [vmem:[%s3298_s9] ss:$0 sm:$0xff] }
 0x420   : > { %v1189_v20 = vpop.xlane.xlu0 %1188 }
 0x421   : > { %2477 = vrcp.f32 %v1189_v20 }
 0x424   : > { %v1355_v21 = vpop.xlane.xlu0 %1354 }
 0x425   : > { %2479 = vrcp.f32 %v1355_v21 }
 0x427   : > { %v2476_v22 = vpop.eup %2475 }
 0x428   : > { %v1030_v23 = vmul.f32 %v2476_v22, %v2468_v7  ;;  %v1521_v24 = vpop.xlane.xlu0 %1520  ;;  %v1823_v7 = vld [vmem:[%s3302_s13 + $0x10] sm:$0xff] }
 0x429   : > { %2481 = vrcp.f32 %v1521_v24  ;;  %v1828_v24 = vld [vmem:[%s3302_s13 + $0x38] sm:$0xff] }
 0x42a   : > { %1031 = vst.msk [vmem:[%s3112_s24] sm:$0xff] %vm850_vm2, %v1030_v23  ;;  %2252 = vmatmul.mubr.msk.f32.vlgmr.msra.gmra.mrb[6].mxu1 %vm850_vm2, %v1030_v23 }
 0x42b   : > { %v2478_v25 = vpop.eup %2477  ;;  %2260 = vmatpush3.msra.mxu1 %v1197_v17  ;;  %2261 = vmatprep.mubr.msk.f32.mxu1 %vm2699_vm0, %v2700_v1 }
 0x42c   : > { %v1191_v26 = vmul.f32 %v2478_v25, %v2470_v10  ;;  %2269 = vmatprep.subr.mxu1 %v2700_v1  ;;  %v1529_v29 = vpop.permute.xlu0 %1528  ;;  %v2359_v10 = vpack.c.bf16 %v1824_v9, %v1823_v7 }
 0x42e   : > { %2135 = vst.msk [vmem:[%s3112_s24 + $0x8] sm:$0xff] %vm850_vm2, %v1191_v26  ;;  %2262 = vmatmul.mubr.msk.f32.vlgmr.msra.gmra.mrb[8].mxu1 %vm850_vm2, %v1191_v26  ;;  %v2147_v26 = vld [vmem:[%s3356_s14] ss:$0 sm:$0xff]  ;;  %s3198_s14 = scalar_lea.hbm %s3359_s23, %s2160_s12 }
 0x42f   : > { %v2480_v27 = vpop.eup %2479  ;;  %2270 = vmatpush3.msra.mxu1 %v1363_v18  ;;  %2271 = vmatprep.mubr.msk.f32.mxu1 %vm2699_vm0, %v2700_v1 }
 0x430   : > { %v1357_v28 = vmul.f32 %v2480_v27, %v2472_v12  ;;  %2279 = vmatprep.subr.mxu1 %v2700_v1  ;;  %v1826_v12 = vld [vmem:[%s3302_s13 + $0x28] sm:$0xff] }
 0x431   : > { %v2362_v13 = vpack.c.bf16 %v1826_v12, %v1825_v11 }
 0x432   : > { %2138 = vst.msk [vmem:[%s3112_s24 + $0x10] sm:$0xff] %vm850_vm2, %v1357_v28  ;;  %2272 = vmatmul.mubr.msk.f32.vlgmr.msra.gmra.mrb[10].mxu1 %vm850_vm2, %v1357_v28 }
 0x433   : > { %v2482_v30 = vpop.eup %2481  ;;  %2280 = vmatpush3.msra.mxu1 %v1529_v29  ;;  %2281 = vmatprep.mubr.msk.f32.mxu1 %vm2699_vm0, %v2700_v1 }
 0x434   : > { %v1523_v31 = vmul.f32 %v2482_v30, %v2474_v15  ;;  %2349 = vmatprep.subr.bf16.mxu1 %v2698_v0 }
 0x436   : > { %2141 = vst.msk [vmem:[%s3112_s24 + $0x18] sm:$0xff] %vm850_vm2, %v1523_v31  ;;  %2282 = vmatmul.mubr.msk.f32.vlgmr.msra.gmra.mrb[12].mxu1 %vm850_vm2, %v1523_v31 }
 0x437   : > { %2303 = vmatprep.mubr.msk.f32.mxu1 %vm2699_vm0, %v2700_v1 }
 0x4fd   : > { %v1102_v38 = vpop.f32.mrb[6].mxu1 }
 0x4fe   : > { %v2253_v39 = vpop.f32.mrb[7].mxu1 }
 0x501   : > { %v1268_v40 = vpop.f32.mrb[8].mxu1 }
 0x502   : > { %1605 = vrot.lane.b32.xlu0 %v1268_v40, %s3320_s2  ;;  %v2263_v41 = vpop.f32.mrb[9].mxu1 }
 0x505   : > { %v1434_v42 = vpop.f32.mrb[10].mxu1 }
 0x506   : > { %1609 = vrot.lane.b32.xlu1 %v1434_v42, %s2705_s10  ;;  %v2273_v43 = vpop.f32.mrb[11].mxu1  ;;  %s3355_s10 = sld [smem:[#allocation27_spill]] }
 0x509   : > { %v1600_v44 = vpop.f32.mrb[12].mxu1 }
 0x50a   : > { %1613 = vrot.lane.b32.xlu0 %v1600_v44, %s2706_s21  ;;  %v2283_v45 = vpop.f32.mrb[13].mxu1  ;;  %s3358_s21 = sld [smem:[#allocation29_spill]] }
 0x50c   : > { %v2146_v21 = vld [vmem:[%s3355_s10] ss:$0 sm:$0xff]  ;;  %s2573_s10 = scalar_lea.vmem %s3200_s20, 512 }
 0x50d   : > { %p2574_p8 = scmp.ne.s32.totalorder %s3200_s20, %s2573_s10 }
 0x50f   : > { %p2575_p1 = pnand %p2574_p8, %p3360_p12 }
 0x510   : > { %v2149_v31 = vld [vmem:[%s3358_s21] ss:$0 sm:$0xff]  ;;  %s2707_s21 = smov [#allocation11]  }
 0x511   : > { %p2576_p10 = pneg %p2575_p1  ;;  %s2577_s2 = sshll.u32 %s2707_s21, 4  ;;  %s2578_s2 = int_to_ptr.vmem [resolvable:$false] %s2577_s2 }
 0x512   : > { %s2579_s24 = scalar_lea.vmem %s2578_s2, 1024  ;;  %p2580_p3 = scmp.lt.s32.totalorder %s3200_s20, %s2578_s2 }
 0x513   : > { %p2581_p5 = scmp.lt.s32.totalorder %s2579_s24, %s2573_s10 }
 0x515   : > { %p2582_p9 = por %p2581_p5, %p2580_p3 }
 0x517   : > { %p2583_p11 = pnand %p2582_p9, %p2576_p10 }
 0x574   : > { %v1606_v46 = vpop.permute.xlu0 %1605 }
 0x575   : > { %v1616_v48 = vsel %vm850_vm2, %v1102_v38, %v1606_v46 }
 0x578   : > { %v1610_v47 = vpop.permute.xlu1 %1609 }
 0x579   : > { %v1618_v49 = vsel %vm1617_vm3, %v1616_v48, %v1610_v47 }
 0x57c   : > { %v1614_v50 = vpop.permute.xlu0 %1613 }
 0x57d   : > { %v1620_v51 = vsel %vm1619_vm4, %v1618_v49, %v1614_v50 }
 0x57e   : > { %2293 = vmatmul.mubr.msk.f32.vlgmr.msra.gmra.mrb[8].mxu0 %vm663_vm1, %v1620_v51 }
 0x57f   : > { %2322 = vmatprep.mubr.msk.f32.mxu0 %vm2699_vm0, %v2700_v1  ;;  %v1736_v1 = vld [vmem:[#allocation9] sm:$0xff] }
 0x580   : > { %v2350_v2 = vpack.c.bf16 %v1737_v63, %v1736_v1 }
 0x582   : > { %2351 = vmatpush3.bf16.msra.mxu1 %v2350_v2 }
 0x583   : > { %2352 = vmatprep.subr.bf16.mxu1 %v2698_v0 }
 0x586   : > { %2354 = vmatpush3.bf16.msra.mxu1 %v2353_v5 }
 0x651   : > { %v1701_v53 = vpop.f32.mrb[8].mxu0 }
 0x652   : > { %v1702_v54 = vadd.f32 %v2143_v52, %v1701_v53  ;;  %v2294_v55 = vpop.f32.mrb[9].mxu0 }
 0x654   : > { %v1705_v56 = vadd.f32 %v1702_v54, %v3036_v14  ;;  %v1821_v14 = vld [vmem:[%s3302_s13] sm:$0xff] }
 0x655   : > { %v2356_v8 = vpack.c.bf16 %v1822_v6, %v1821_v14 }
 0x656   : > { %v1708_v57 = vsel %vm663_vm1, %v1705_v56, 0.0 }
 0x657   : > { %1709 = vadd.xlane.f32.xlu0 %v1708_v57  ;;  %2357 = vmatpush3.bf16.msra.mxu0 %v2356_v8 }
 0x658   : > { %2358 = vmatprep.subr.bf16.mxu0 %v2698_v0 }
 0x65b   : > { %2360 = vmatpush3.bf16.msra.mxu0 %v2359_v10 }
 0x65c   : > { %2361 = vmatprep.subr.bf16.mxu0 %v2698_v0 }
 0x65f   : > { %2363 = vmatpush3.bf16.msra.mxu0 %v2362_v13 }
 0x660   : > { %2364 = vmatprep.subr.bf16.mxu0 %v2698_v0  ;;  %v1827_v0 = vld [vmem:[%s3302_s13 + $0x30] sm:$0xff] }
 0x661   : > { %v2365_v25 = vpack.c.bf16 %v1828_v24, %v1827_v0 }
 0x663   : > { %2366 = vmatpush3.bf16.msra.mxu0 %v2365_v25 }
 0x6e4   : > { %v1710_v58 = vpop.xlane.xlu0 %1709 }
 0x6e5   : > { %v1712_v59 = vmul.f32 0.03125, %v1710_v58 }
 0x6e7   : > { %v1713_v60 = vsub.f32 %v1705_v56, %v1712_v59 }
 0x6e9   : > { %v1714_v61 = vmul.f32 %v1713_v60, %v1713_v60 }
 0x6eb   : > { %v1715_v62 = vsel %vm663_vm1, %v1714_v61, 0.0 }
 0x6ec   : > { %1716 = vadd.xlane.f32.xlu1 %v1715_v62 }
 0x779   : > { %v1717_v15 = vpop.xlane.xlu1 %1716 }
 0x77a   : > { %v1718_v16 = vmul.f32 0.03125, %v1717_v15 }
 0x77c   : > { %v1719_v17 = vadd.f32 1e-05, %v1718_v16 }
 0x77e   : > { %2483 = vrsqrt.f32 %v1719_v17 }
 0x788   : > { %v2484_v18 = vpop.eup %2483 }
 0x789   : > { %v1721_v20 = vmul.f32 %v2484_v18, %v1713_v60 }
 0x78b   : > { %v1728_v22 = vmul.f32 %v2145_v19, %v1721_v20 }
 0x78d   : > { %v1735_v23 = vadd.f32 %v2146_v21, %v1728_v22 }
 0x78f   : > { %2304 = vmatmul.mubr.msk.f32.vlgmr.msra.gmra.mrb[14].mxu1 %vm663_vm1, %v1735_v23 }
 0x862   : > { %v1816_v27 = vpop.f32.mrb[14].mxu1 }
 0x863   : > { %v1817_v28 = vadd.f32 %v2147_v26, %v1816_v27  ;;  %v2305_v29 = vpop.f32.mrb[15].mxu1 }
 0x865   : > { %v1820_v30 = vmax.f32 %v1817_v28, 0.0 }
 0x867   : > { %2323 = vmatmul.mubr.msk.f32.vlgmr.msra.gmra.mrb[10].mxu0 %vm1836_vm5, %v1820_v30 }
 0x93a   : > { %v1906_v32 = vpop.f32.mrb[10].mxu0 }
 0x93b   : > { %v1907_v33 = vadd.f32 %v2149_v31, %v1906_v32  ;;  %v2324_v34 = vpop.f32.mrb[11].mxu0 }
 0x93d   : > { %v1910_v35 = vadd.f32 %v1907_v33, %v1735_v23 }
 0x93f   : > { %v1913_v36 = vsel %vm663_vm1, %v1910_v35, 0.0 }
 0x940   : > { %1914 = vadd.xlane.f32.xlu0 %v1913_v36 }
 0x9cd   : > { %v1915_v37 = vpop.xlane.xlu0 %1914 }
 0x9ce   : > { %v1916_v38 = vmul.f32 0.03125, %v1915_v37 }
 0x9d0   : > { %v1917_v39 = vsub.f32 %v1910_v35, %v1916_v38 }
 0x9d2   : > { %v1918_v40 = vmul.f32 %v1917_v39, %v1917_v39 }
 0x9d4   : > { %v1919_v41 = vsel %vm663_vm1, %v1918_v40, 0.0 }
 0x9d5   : > { %1920 = vadd.xlane.f32.xlu0 %v1919_v41 }
 0x9d6   : > { %2586 = shalt.err (!%p2583_p11)
}
 0x9d7   : > { %s2587_s12 = scalar_lea.hbm %s3198_s14, 512  ;;  %s2591_s21 = scalar_lea.hbm %s3359_s23, 1024 }
 0x9d8   : > { %p2588_p0 = scmp.ne.s32.totalorder %s3198_s14, %s2587_s12  ;;  %p2592_p6 = scmp.lt.u32.totalorder %s3198_s14, %s3359_s23 }
 0x9d9   : > { %p2593_p7 = scmp.lt.u32.totalorder %s2591_s21, %s2587_s12  ;;  %p2595_p8 = scmp.lt.u32.totalorder %s2587_s12, %s3198_s14 }
 0x9da   : > { %p2589_p4 = pnand %p2588_p0, %p3360_p12 }
 0x9db   : > { %p2594_p2 = por %p2593_p7, %p2592_p6 }
 0x9dc   : > { %p2590_p13 = pneg %p2589_p4 }
 0x9dd   : > { %p2596_p1 = por %p2595_p8, %p2594_p2 }
 0x9df   : > { %p2597_p10 = pnand %p2596_p1, %p2590_p13 }
 0x9e1   : > { %2600 = shalt.err (!%p2597_p10)
}
 0x9e2   : > { %s2708_s10 = smov 128   ;;  %s3361_s24 = smov 8  }
 0x9e3   : > { %s3362_s3 = scalar_lea.sflag [#allocation12], %s2990_s18  ;;  %s3363_s27 = sld [smem:[#allocation30_spill]] }
 0x9e4   : > { %2378 = dma.vmem_to_hbm [thread:$0]  (%p3360_p12), %s3200_s20, 512, %s3198_s14, %s3362_s3, %s2708_s10, %s2708_s10, %s3361_s24  }
 0x9e5   : > { %s3364_s2 = sld [smem:[#allocation31_spill]]  ;;  %s2155_s4 = sshll.u32 %s3357_s25, 7 }
 0x9e6   : > { %s3365_s5 = sshll.u32 %s2990_s18, 3  ;;  %s3366_s10 = sld [smem:[#allocation32_spill]] }
 0x9e7   : > { %s639_s6 = scalar_lea.vmem [#allocation10], %s3365_s5  ;;  %s1942_s22 = scalar_lea.sflag [#allocation6], %s2990_s18 }
 0x9e8   : > { %s1961_s3 = sshll.u32 %s639_s6, 4  ;;  %s2709_s5 = smov [#allocation10]   ;;  %s3241_s3 = int_to_ptr.vmem [resolvable:$true] %s1961_s3 }
 0x9e9   : > { %v2151_v46 = vld [vmem:[%s3363_s27] ss:$0 sm:$0xff]  ;;  %s2601_s12 = scalar_lea.vmem %s3241_s3, 128  ;;  %s2605_s25 = sshll.u32 %s2709_s5, 4  ;;  %s2606_s25 = int_to_ptr.vmem [resolvable:$false] %s2605_s25 }
 0x9ea   : > { %p2602_p3 = scmp.ne.s32.totalorder %s3241_s3, %s2601_s12  ;;  %s2607_s27 = scalar_lea.vmem %s2606_s25, 256 }
 0x9eb   : > { %v2152_v48 = vld [vmem:[%s3364_s2] ss:$0 sm:$0xff]  ;;  %p2608_p11 = scmp.lt.s32.totalorder %s3241_s3, %s2606_s25  ;;  %p2609_p0 = scmp.lt.s32.totalorder %s2607_s27, %s2601_s12 }
 0x9ec   : > { %s3239_s24 = scalar_lea.hbm %s3366_s10, %s2155_s4  ;;  %p2603_p5 = pnand %p2602_p3, %p3360_p12 }
 0x9ed   : > { %p2610_p4 = por %p2609_p0, %p2608_p11 }
 0x9ee   : > { %p2604_p9 = pneg %p2603_p5 }
 0x9f0   : > { %p2611_p13 = pnand %p2610_p4, %p2604_p9 }
 0xa62   : > { %v1921_v42 = vpop.xlane.xlu0 %1920 }
 0xa63   : > { %v1922_v43 = vmul.f32 0.03125, %v1921_v42 }
 0xa65   : > { %v1923_v44 = vadd.f32 1e-05, %v1922_v43 }
 0xa67   : > { %2485 = vrsqrt.f32 %v1923_v44 }
 0xa71   : > { %v2486_v45 = vpop.eup %2485 }
 0xa72   : > { %v1925_v47 = vmul.f32 %v2486_v45, %v1917_v39 }
 0xa74   : > { %v1932_v49 = vmul.f32 %v2151_v46, %v1925_v47 }
 0xa76   : > { %v1939_v50 = vadd.f32 %v2152_v48, %v1932_v49 }
 0xa78   : > { %1940 = vst.msk [vmem:[%s639_s6] sm:$0xff] %vm663_vm1, %v1939_v50 }
 0xa79   : > { %2614 = shalt.err (!%p2611_p13)
}
 0xa7a   : > { %s2615_s4 = scalar_lea.hbm %s3239_s24, 128  ;;  %s2619_s16 = scalar_lea.hbm %s3366_s10, 256 }
 0xa7b   : > { %p2616_p6 = scmp.ne.s32.totalorder %s3239_s24, %s2615_s4  ;;  %p2620_p8 = scmp.lt.u32.totalorder %s3239_s24, %s3366_s10 }
 0xa7c   : > { %p2621_p1 = scmp.lt.u32.totalorder %s2619_s16, %s2615_s4  ;;  %p2623_p3 = scmp.lt.u32.totalorder %s2615_s4, %s3239_s24 }
 0xa7d   : > { %p2617_p7 = pnand %p2616_p6, %p3360_p12 }
 0xa7e   : > { %p2622_p10 = por %p2621_p1, %p2620_p8 }
 0xa7f   : > { %p2618_p2 = pneg %p2617_p7 }
 0xa80   : > { %p2624_p5 = por %p2623_p3, %p2622_p10 }
 0xa82   : > { %p2625_p9 = pnand %p2624_p5, %p2618_p2 }
 0xa84   : > { %2628 = shalt.err (!%p2625_p9)
}
 0xa85   : > { %2377 = dma.vmem_to_hbm [thread:$0]  (%p3360_p12), %s3241_s3, 128, %s3239_s24, %s1942_s22  }
 0xa86 PF: > { %s3367_s20 = sld [smem:[#allocation17_spill]]  ;;  %s3368_s14 = sld [smem:[#allocation19_spill]] }
 0xa87   : > { %p3370_p0 = scmp.ge.s32.totalorder %s2691_s19, 2 }
 0xa8c   : > { %s1990_s12 = sand.u32 1, %s3367_s20   ;;  %p3369_p11 = scmp.ne.s32.totalorder %s3368_s14, 0 }
 0xa8d   : > { %s1991_s5 = scalar_lea.sflag [#allocation6], %s1990_s12 }
 0xa8e   : > { %p2393_p4 = pnand %p3370_p0, %p3369_p11 }
 0xa90   : > { %2662 = dma.done.wait (!%p2393_p4), %s1991_s5, 128  }
 0xa91   : > { %2664 = vsyncadd (!%p2393_p4), %s1991_s5, 4294967168  ;;  %s2000_s25 = scalar_lea.sflag [#allocation12], %s1990_s12 }
 0xa92   : > { %2666 = dma.done.wait (!%p2393_p4), %s2000_s25, 512  }
 0xa93   : > { %2668 = vsyncadd (!%p2393_p4), %s2000_s25, 4294966784  ;;  %s39_s19 = sadd.s32 1, %s2691_s19   ;;  %s3371_s1 = smov %s3378_s30 }
 0xa94   : > { %p36_p13 = scmp.ge.s32.totalorder %s39_s19, 4   ;;  %s3372_s27 = smov %s2675_s28 }
 0xa95   : > { %s3373_s28 = smov %s2679_s29  ;;  %s3374_s29 = smov %s2947_s15 }
 0xa96   : > { %s3375_s30 = smov %s2687_s0  ;;  %s3376_s0 = smov %s3371_s1 }
 0xa97   :  { %38 = sbr.rel (!%p36_p13) target bundleno = 24 (0x18), region = 166 }
 0xa9e   :  { %2005 = vsyncpa [#allocation5], 1 }
 0xa9f   :  { %2007 = vsyncpa [#allocation5 + $0x1], 1 }
 0xaa0   :  { %2008 = vsyncpa [#allocation8], 1 }
 0xaa1   :  { %2009 = vsyncpa [#allocation6], 1 }
 0xaa2   :  { %2011 = vsyncpa [#allocation6 + $0x1], 1 }
 0xaa3   :  { %2012 = vsyncpa [#allocation12], 1 }
 0xaa4   :  { %2014 = vsyncpa [#allocation12 + $0x1], 1 }

</bundles_post_ra>
